<compile_context>
chip_gen: v6e
topology: v6e:2x2x1
jax: 0.10.0
libtpu: 0.0.40
codegen_flags: <defaults>
</compile_context>

<pallas_src>
import math

import jax
import jax.numpy as jnp
import numpy as np
from jax.experimental import pallas as pl
from jax.experimental.pallas import tpu as pltpu  # noqa: F401  (TPU backend)

# ---------------- model hyper-parameters (small, consistent with the module) ---
L = 8            # sequence length
N = 2            # batch size
D_MODEL = 32     # d_model
NHEAD = 4        # number of attention heads
D_HEAD = D_MODEL // NHEAD
D_FF = 64        # dim_feedforward
LN_EPS = 1e-5


# ---------------- Pallas kernel -------------------------------------------------
def _encoder_layer_kernel(
    x_ref,        # (L, N*E)     seq-major "wide" input (free reshape of (L, N, E))
    wqkv_ref,     # (E, 3E)      in_proj_weight, pre-transposed, Q cols pre-scaled
    bqkv_ref,     # (1, 3E)      in_proj_bias, Q part pre-scaled
    wo_ref,       # (E, E)       out_proj.weight, pre-transposed
    bo_ref,       # (1, E)
    ln1w_ref,     # (1, E)
    ln1b_ref,     # (1, E)
    w1_ref,       # (E, F)       linear1.weight, pre-transposed
    b1_ref,       # (1, F)
    w2_ref,       # (F, E)       linear2.weight, pre-transposed
    b2_ref,       # (1, E)
    ln2w_ref,     # (1, E)
    ln2b_ref,     # (1, E)
    y_ref,        # (L, N*E)     output, "wide" seq-major layout
    attnw_ref,    # (L, N*H*L)   attention weights, lane-dense combined slab
):
    x_wide = x_ref[...]                                          # (L, N*E)
    # seq-major wide -> batch-major flat (N*L, E): row r = n*L + l
    x = jnp.concatenate(
        [x_wide[:, n * D_MODEL:(n + 1) * D_MODEL] for n in range(N)], axis=0)

    # --- QKV projection for the whole batch in one MXU pass ---
    # (weights pre-transposed, Q rows already scaled by 1/sqrt(D_HEAD))
    qkv = jnp.dot(x, wqkv_ref[...], preferred_element_type=jnp.float32) + bqkv_ref[0]
    q = qkv[:, :D_MODEL]
    k = qkv[:, D_MODEL:2 * D_MODEL]
    v = qkv[:, 2 * D_MODEL:]

    wo_t = wo_ref[...]                                           # (E, E)

    attn_blocks = []   # per-batch (L, E) attention outputs (out-proj already applied)
    prob_blocks = []   # per (n, h) (L, L) softmax probabilities
    for n in range(N):
        rows = slice(n * L, (n + 1) * L)
        q_n = q[rows]
        k_n = k[rows]
        v_n = v[rows]                                            # (L, E)
        acc = None
        for h in range(NHEAD):
            cols = slice(h * D_HEAD, (h + 1) * D_HEAD)
            # scores: contract the head dim of q and k (no explicit transpose)
            s = jax.lax.dot_general(
                q_n[:, cols], k_n[:, cols],
                dimension_numbers=(((1,), (1,)), ((), ())),
                preferred_element_type=jnp.float32)              # (L, L)
            m = jnp.max(s, axis=-1, keepdims=True)
            e = jnp.exp(s - m)
            denom = jnp.sum(e, axis=-1, keepdims=True)
            p = e * pl.reciprocal(denom, approx=True)            # softmax (EUP recip)
            prob_blocks.append(p)
            # PV, then fold the per-head slice of the output projection in here
            pv = jnp.dot(p, v_n[:, cols], preferred_element_type=jnp.float32)   # (L, Dh)
            contrib = jnp.dot(pv, wo_t[cols, :], preferred_element_type=jnp.float32)
            acc = contrib if acc is None else acc + contrib      # VPU add (cheap)
        attn_blocks.append(acc)

    # single lane-dense store of all attention probabilities: (L, N*H*L) = (8, 64)
    attnw_ref[...] = jnp.concatenate(prob_blocks, axis=1)

    attn = jnp.concatenate(attn_blocks, axis=0) + bo_ref[0]      # (N*L, E)

    # --- residual + LayerNorm 1 ---
    x1 = x + attn
    mu1 = jnp.mean(x1, axis=-1, keepdims=True)
    var1 = jnp.mean((x1 - mu1) ** 2, axis=-1, keepdims=True)
    x1 = (x1 - mu1) * jax.lax.rsqrt(var1 + LN_EPS) * ln1w_ref[0] + ln1b_ref[0]

    # --- feed-forward: linear1 -> ReLU -> linear2 ---
    h1 = jnp.dot(x1, w1_ref[...], preferred_element_type=jnp.float32) + b1_ref[0]
    h1 = jnp.maximum(h1, 0.0)
    ff = jnp.dot(h1, w2_ref[...], preferred_element_type=jnp.float32) + b2_ref[0]

    # --- residual + LayerNorm 2 ---
    x2 = x1 + ff
    mu2 = jnp.mean(x2, axis=-1, keepdims=True)
    var2 = jnp.mean((x2 - mu2) ** 2, axis=-1, keepdims=True)
    x2 = (x2 - mu2) * jax.lax.rsqrt(var2 + LN_EPS) * ln2w_ref[0] + ln2b_ref[0]

    # batch-major flat -> seq-major wide, one combined store: (L, N*E) = (8, 64)
    y_ref[...] = jnp.concatenate(
        [x2[n * L:(n + 1) * L, :] for n in range(N)], axis=1)


# ---------------- wrapper --------------------------------------------------------
@jax.jit
def transformer_encoder_layer(src, params):
    """src: (L, N, E) as in PyTorch. Returns (out (L, N, E), attn_weights (N, H, L, L))."""
    # Pre-transpose weights and fold the 1/sqrt(d_head) scale into the Q projection.
    scale = 1.0 / math.sqrt(D_HEAD)
    row_scale = jnp.concatenate(
        [jnp.full((D_MODEL,), scale, jnp.float32),
         jnp.ones((2 * D_MODEL,), jnp.float32)])                 # (3E,)
    wqkv_t = (params["wqkv"] * row_scale[:, None]).T             # (E, 3E)
    bqkv_s = params["bqkv"] * row_scale[None, :]                 # (1, 3E)
    wo_t = params["wo"].T                                        # (E, E)
    w1_t = params["w1"].T                                        # (E, F)
    w2_t = params["w2"].T                                        # (F, E)

    # Free metadata reshape: (L, N, E) -> (L, N*E). No transpose on the data path.
    x_wide = src.reshape(L, N * D_MODEL)

    y_wide, attnw_wide = pl.pallas_call(
        _encoder_layer_kernel,
        out_shape=(
            jax.ShapeDtypeStruct((L, N * D_MODEL), jnp.float32),
            jax.ShapeDtypeStruct((L, N * NHEAD * L), jnp.float32),
        ),
        cost_estimate=pl.CostEstimate(
            flops=280_000, transcendentals=640, bytes_accessed=45_000),
    )(
        x_wide,
        wqkv_t, bqkv_s, wo_t, params["bo"],
        params["ln1w"], params["ln1b"],
        w1_t, params["b1"], w2_t, params["b2"],
        params["ln2w"], params["ln2b"],
    )

    out = y_wide.reshape(L, N, D_MODEL)                          # free reshape
    attn_w = jnp.transpose(
        attnw_wide.reshape(L, N, NHEAD, L), (1, 2, 0, 3))        # (N, H, L, L)
    return out, attn_w


# ---------------- pure-JAX reference (sanity check) ------------------------------
def reference(src, p):
    x = jnp.transpose(src, (1, 0, 2))  # (N, L, E)
    qkv = jnp.einsum("nld,ed->nle", x, p["wqkv"]) + p["bqkv"][0]
    q, k, v = jnp.split(qkv, 3, axis=-1)

    def heads(t):  # (N, L, E) -> (N, H, L, Dh)
        return jnp.transpose(t.reshape(N, L, NHEAD, D_HEAD), (0, 2, 1, 3))

    qh, kh, vh = heads(q), heads(k), heads(v)
    s = jnp.einsum("nhld,nhmd->nhlm", qh, kh) / math.sqrt(D_HEAD)
    w = jax.nn.softmax(s, axis=-1)
    o = jnp.einsum("nhlm,nhmd->nhld", w, vh)
    o = jnp.transpose(o, (0, 2, 1, 3)).reshape(N, L, D_MODEL)
    o = jnp.einsum("nld,ed->nle", o, p["wo"]) + p["bo"][0]

    def ln(t, g, b):
        mu = jnp.mean(t, -1, keepdims=True)
        var = jnp.mean((t - mu) ** 2, -1, keepdims=True)
        return (t - mu) * jax.lax.rsqrt(var + LN_EPS) * g[0] + b[0]

    x1 = ln(x + o, p["ln1w"], p["ln1b"])
    h = jax.nn.relu(jnp.einsum("nld,fd->nlf", x1, p["w1"]) + p["b1"][0])
    ff = jnp.einsum("nlf,ef->nle", h, p["w2"]) + p["b2"][0]
    x2 = ln(x1 + ff, p["ln2w"], p["ln2b"])
    return jnp.transpose(x2, (1, 0, 2)), w


# ---------------- parameter init ------------------------------------------------
def init_params(key):
    ks = jax.random.split(key, 8)
    s = 0.05
    return {
        "wqkv": s * jax.random.normal(ks[0], (3 * D_MODEL, D_MODEL), jnp.float32),
        "bqkv": s * jax.random.normal(ks[1], (1, 3 * D_MODEL), jnp.float32),
        "wo":   s * jax.random.normal(ks[2], (D_MODEL, D_MODEL), jnp.float32),
        "bo":   s * jax.random.normal(ks[3], (1, D_MODEL), jnp.float32),
        "ln1w": jnp.ones((1, D_MODEL), jnp.float32),
        "ln1b": jnp.zeros((1, D_MODEL), jnp.float32),
        "w1":   s * jax.random.normal(ks[4], (D_FF, D_MODEL), jnp.float32),
        "b1":   s * jax.random.normal(ks[5], (1, D_FF), jnp.float32),
        "w2":   s * jax.random.normal(ks[6], (D_MODEL, D_FF), jnp.float32),
        "b2":   s * jax.random.normal(ks[7], (1, D_MODEL), jnp.float32),
        "ln2w": jnp.ones((1, D_MODEL), jnp.float32),
        "ln2b": jnp.zeros((1, D_MODEL), jnp.float32),
    }


if __name__ == "__main__":
    key = jax.random.PRNGKey(0)
    k_src, k_par = jax.random.split(key)

    src = jax.random.normal(k_src, (L, N, D_MODEL), jnp.float32)  # PyTorch (L, N, E)
    params = init_params(k_par)

    out, attn_w = transformer_encoder_layer(src, params)
    out = jax.block_until_ready(out)
    attn_w = jax.block_until_ready(attn_w)

    ref_out, ref_w = reference(src, params)
    # slightly looser tolerance to accommodate the EUP approximate reciprocal in softmax
    np.testing.assert_allclose(np.asarray(out), np.asarray(ref_out), rtol=2e-3, atol=2e-3)
    np.testing.assert_allclose(np.asarray(attn_w), np.asarray(ref_w), rtol=2e-3, atol=2e-3)

    assert out.shape == (L, N, D_MODEL)
    assert attn_w.shape == (N, NHEAD, L, L)
    print("KERNEL_OK")
</pallas_src>

<mosaic_0001>
module attributes {stable_mosaic.version = 11 : i64} {
  func.func @_encoder_layer_kernel(%arg0: memref<8x64xf32, #tpu.memory_space<vmem>>, %arg1: memref<32x96xf32, #tpu.memory_space<vmem>>, %arg2: memref<1x96xf32, #tpu.memory_space<vmem>>, %arg3: memref<32x32xf32, #tpu.memory_space<vmem>>, %arg4: memref<1x32xf32, #tpu.memory_space<vmem>>, %arg5: memref<1x32xf32, #tpu.memory_space<vmem>>, %arg6: memref<1x32xf32, #tpu.memory_space<vmem>>, %arg7: memref<32x64xf32, #tpu.memory_space<vmem>>, %arg8: memref<1x64xf32, #tpu.memory_space<vmem>>, %arg9: memref<64x32xf32, #tpu.memory_space<vmem>>, %arg10: memref<1x32xf32, #tpu.memory_space<vmem>>, %arg11: memref<1x32xf32, #tpu.memory_space<vmem>>, %arg12: memref<1x32xf32, #tpu.memory_space<vmem>>, %arg13: memref<8x64xf32, #tpu.memory_space<vmem>>, %arg14: memref<8x64xf32, #tpu.memory_space<vmem>>) attributes {dimension_semantics = [], scalar_prefetch = 0 : i64, scratch_operands = 0 : i64, tpu.core_type = #tpu.core_type<tc>} {
    %c0 = arith.constant 0 : index
    %c0_0 = arith.constant 0 : index
    %0 = vector.load %arg0[%c0, %c0_0] : memref<8x64xf32, #tpu.memory_space<vmem>>, vector<8x64xf32>
    %1 = vector.extract_strided_slice %0 {offsets = [0, 0], sizes = [8, 32], strides = [1, 1]} : vector<8x64xf32> to vector<8x32xf32>
    %2 = vector.extract_strided_slice %0 {offsets = [0, 32], sizes = [8, 32], strides = [1, 1]} : vector<8x64xf32> to vector<8x32xf32>
    %3 = tpu.concatenate %1, %2 in 0 : vector<8x32xf32>, vector<8x32xf32> -> vector<16x32xf32>
    %c0_1 = arith.constant 0 : index
    %c0_2 = arith.constant 0 : index
    %4 = vector.load %arg1[%c0_1, %c0_2] : memref<32x96xf32, #tpu.memory_space<vmem>>, vector<32x96xf32>
    %cst = arith.constant dense<0.000000e+00> : vector<16x96xf32>
    %5 = tpu.matmul %3, %4, %cst {dimension_numbers = #tpu.dot_dimension_numbers<[1], [0], [0], [1], [0, 0, 1, 1], [], []>} : vector<16x32xf32>, vector<32x96xf32>, vector<16x96xf32> -> vector<16x96xf32>
    %c0_3 = arith.constant 0 : index
    %c0_4 = arith.constant 0 : index
    %6 = vector.load %arg2[%c0_3, %c0_4] : memref<1x96xf32, #tpu.memory_space<vmem>>, vector<1x96xf32>
    %7 = vector.shape_cast %6 : vector<1x96xf32> to vector<96xf32>
    %8 = vector.shape_cast %7 : vector<96xf32> to vector<1x96xf32>
    %9 = vector.broadcast %8 : vector<1x96xf32> to vector<16x96xf32>
    %10 = arith.addf %5, %9 : vector<16x96xf32>
    %11 = vector.extract_strided_slice %10 {offsets = [0, 0], sizes = [16, 32], strides = [1, 1]} : vector<16x96xf32> to vector<16x32xf32>
    %12 = vector.extract_strided_slice %10 {offsets = [0, 32], sizes = [16, 32], strides = [1, 1]} : vector<16x96xf32> to vector<16x32xf32>
    %13 = vector.extract_strided_slice %10 {offsets = [0, 64], sizes = [16, 32], strides = [1, 1]} : vector<16x96xf32> to vector<16x32xf32>
    %c0_5 = arith.constant 0 : index
    %c0_6 = arith.constant 0 : index
    %14 = vector.load %arg3[%c0_5, %c0_6] : memref<32x32xf32, #tpu.memory_space<vmem>>, vector<32x32xf32>
    %15 = vector.extract_strided_slice %11 {offsets = [0, 0], sizes = [8, 32], strides = [1, 1]} : vector<16x32xf32> to vector<8x32xf32>
    %16 = vector.extract_strided_slice %12 {offsets = [0, 0], sizes = [8, 32], strides = [1, 1]} : vector<16x32xf32> to vector<8x32xf32>
    %17 = vector.extract_strided_slice %13 {offsets = [0, 0], sizes = [8, 32], strides = [1, 1]} : vector<16x32xf32> to vector<8x32xf32>
    %18 = vector.extract_strided_slice %15 {offsets = [0, 0], sizes = [8, 8], strides = [1, 1]} : vector<8x32xf32> to vector<8x8xf32>
    %19 = vector.extract_strided_slice %16 {offsets = [0, 0], sizes = [8, 8], strides = [1, 1]} : vector<8x32xf32> to vector<8x8xf32>
    %cst_7 = arith.constant dense<0.000000e+00> : vector<8x8xf32>
    %20 = tpu.matmul %18, %19, %cst_7 {dimension_numbers = #tpu.dot_dimension_numbers<[1], [1], [0], [0], [0, 0, 1, 0], [], []>} : vector<8x8xf32>, vector<8x8xf32>, vector<8x8xf32> -> vector<8x8xf32>
    %cst_8 = arith.constant dense<0xFF800000> : vector<8xf32>
    %21 = vector.multi_reduction <maximumf>, %20, %cst_8 [1] : vector<8x8xf32> to vector<8xf32>
    %22 = vector.shape_cast %21 : vector<8xf32> to vector<8x1xf32>
    %23 = vector.broadcast %22 : vector<8x1xf32> to vector<8x8xf32>
    %24 = arith.subf %20, %23 : vector<8x8xf32>
    %25 = math.exp %24 : vector<8x8xf32>
    %cst_9 = arith.constant dense<0.000000e+00> : vector<8xf32>
    %26 = vector.multi_reduction <add>, %25, %cst_9 [1] : vector<8x8xf32> to vector<8xf32>
    %27 = vector.shape_cast %26 : vector<8xf32> to vector<8x1xf32>
    %28 = tpu.reciprocal %27 {approx = true} : vector<8x1xf32> -> vector<8x1xf32>
    %29 = vector.broadcast %28 : vector<8x1xf32> to vector<8x8xf32>
    %30 = arith.mulf %25, %29 : vector<8x8xf32>
    %31 = vector.extract_strided_slice %17 {offsets = [0, 0], sizes = [8, 8], strides = [1, 1]} : vector<8x32xf32> to vector<8x8xf32>
    %cst_10 = arith.constant dense<0.000000e+00> : vector<8x8xf32>
    %32 = tpu.matmul %30, %31, %cst_10 {dimension_numbers = #tpu.dot_dimension_numbers<[1], [0], [0], [1], [0, 0, 1, 1], [], []>} : vector<8x8xf32>, vector<8x8xf32>, vector<8x8xf32> -> vector<8x8xf32>
    %33 = vector.extract_strided_slice %14 {offsets = [0, 0], sizes = [8, 32], strides = [1, 1]} : vector<32x32xf32> to vector<8x32xf32>
    %cst_11 = arith.constant dense<0.000000e+00> : vector<8x32xf32>
    %34 = tpu.matmul %32, %33, %cst_11 {dimension_numbers = #tpu.dot_dimension_numbers<[1], [0], [0], [1], [0, 0, 1, 1], [], []>} : vector<8x8xf32>, vector<8x32xf32>, vector<8x32xf32> -> vector<8x32xf32>
    %35 = vector.extract_strided_slice %15 {offsets = [0, 8], sizes = [8, 8], strides = [1, 1]} : vector<8x32xf32> to vector<8x8xf32>
    %36 = vector.extract_strided_slice %16 {offsets = [0, 8], sizes = [8, 8], strides = [1, 1]} : vector<8x32xf32> to vector<8x8xf32>
    %cst_12 = arith.constant dense<0.000000e+00> : vector<8x8xf32>
    %37 = tpu.matmul %35, %36, %cst_12 {dimension_numbers = #tpu.dot_dimension_numbers<[1], [1], [0], [0], [0, 0, 1, 0], [], []>} : vector<8x8xf32>, vector<8x8xf32>, vector<8x8xf32> -> vector<8x8xf32>
    %cst_13 = arith.constant dense<0xFF800000> : vector<8xf32>
    %38 = vector.multi_reduction <maximumf>, %37, %cst_13 [1] : vector<8x8xf32> to vector<8xf32>
    %39 = vector.shape_cast %38 : vector<8xf32> to vector<8x1xf32>
    %40 = vector.broadcast %39 : vector<8x1xf32> to vector<8x8xf32>
    %41 = arith.subf %37, %40 : vector<8x8xf32>
    %42 = math.exp %41 : vector<8x8xf32>
    %cst_14 = arith.constant dense<0.000000e+00> : vector<8xf32>
    %43 = vector.multi_reduction <add>, %42, %cst_14 [1] : vector<8x8xf32> to vector<8xf32>
    %44 = vector.shape_cast %43 : vector<8xf32> to vector<8x1xf32>
    %45 = tpu.reciprocal %44 {approx = true} : vector<8x1xf32> -> vector<8x1xf32>
    %46 = vector.broadcast %45 : vector<8x1xf32> to vector<8x8xf32>
    %47 = arith.mulf %42, %46 : vector<8x8xf32>
    %48 = vector.extract_strided_slice %17 {offsets = [0, 8], sizes = [8, 8], strides = [1, 1]} : vector<8x32xf32> to vector<8x8xf32>
    %cst_15 = arith.constant dense<0.000000e+00> : vector<8x8xf32>
    %49 = tpu.matmul %47, %48, %cst_15 {dimension_numbers = #tpu.dot_dimension_numbers<[1], [0], [0], [1], [0, 0, 1, 1], [], []>} : vector<8x8xf32>, vector<8x8xf32>, vector<8x8xf32> -> vector<8x8xf32>
    %50 = vector.extract_strided_slice %14 {offsets = [8, 0], sizes = [8, 32], strides = [1, 1]} : vector<32x32xf32> to vector<8x32xf32>
    %cst_16 = arith.constant dense<0.000000e+00> : vector<8x32xf32>
    %51 = tpu.matmul %49, %50, %cst_16 {dimension_numbers = #tpu.dot_dimension_numbers<[1], [0], [0], [1], [0, 0, 1, 1], [], []>} : vector<8x8xf32>, vector<8x32xf32>, vector<8x32xf32> -> vector<8x32xf32>
    %52 = arith.addf %34, %51 : vector<8x32xf32>
    %53 = vector.extract_strided_slice %15 {offsets = [0, 16], sizes = [8, 8], strides = [1, 1]} : vector<8x32xf32> to vector<8x8xf32>
    %54 = vector.extract_strided_slice %16 {offsets = [0, 16], sizes = [8, 8], strides = [1, 1]} : vector<8x32xf32> to vector<8x8xf32>
    %cst_17 = arith.constant dense<0.000000e+00> : vector<8x8xf32>
    %55 = tpu.matmul %53, %54, %cst_17 {dimension_numbers = #tpu.dot_dimension_numbers<[1], [1], [0], [0], [0, 0, 1, 0], [], []>} : vector<8x8xf32>, vector<8x8xf32>, vector<8x8xf32> -> vector<8x8xf32>
    %cst_18 = arith.constant dense<0xFF800000> : vector<8xf32>
    %56 = vector.multi_reduction <maximumf>, %55, %cst_18 [1] : vector<8x8xf32> to vector<8xf32>
    %57 = vector.shape_cast %56 : vector<8xf32> to vector<8x1xf32>
    %58 = vector.broadcast %57 : vector<8x1xf32> to vector<8x8xf32>
    %59 = arith.subf %55, %58 : vector<8x8xf32>
    %60 = math.exp %59 : vector<8x8xf32>
    %cst_19 = arith.constant dense<0.000000e+00> : vector<8xf32>
    %61 = vector.multi_reduction <add>, %60, %cst_19 [1] : vector<8x8xf32> to vector<8xf32>
    %62 = vector.shape_cast %61 : vector<8xf32> to vector<8x1xf32>
    %63 = tpu.reciprocal %62 {approx = true} : vector<8x1xf32> -> vector<8x1xf32>
    %64 = vector.broadcast %63 : vector<8x1xf32> to vector<8x8xf32>
    %65 = arith.mulf %60, %64 : vector<8x8xf32>
    %66 = vector.extract_strided_slice %17 {offsets = [0, 16], sizes = [8, 8], strides = [1, 1]} : vector<8x32xf32> to vector<8x8xf32>
    %cst_20 = arith.constant dense<0.000000e+00> : vector<8x8xf32>
    %67 = tpu.matmul %65, %66, %cst_20 {dimension_numbers = #tpu.dot_dimension_numbers<[1], [0], [0], [1], [0, 0, 1, 1], [], []>} : vector<8x8xf32>, vector<8x8xf32>, vector<8x8xf32> -> vector<8x8xf32>
    %68 = vector.extract_strided_slice %14 {offsets = [16, 0], sizes = [8, 32], strides = [1, 1]} : vector<32x32xf32> to vector<8x32xf32>
    %cst_21 = arith.constant dense<0.000000e+00> : vector<8x32xf32>
    %69 = tpu.matmul %67, %68, %cst_21 {dimension_numbers = #tpu.dot_dimension_numbers<[1], [0], [0], [1], [0, 0, 1, 1], [], []>} : vector<8x8xf32>, vector<8x32xf32>, vector<8x32xf32> -> vector<8x32xf32>
    %70 = arith.addf %52, %69 : vector<8x32xf32>
    %71 = vector.extract_strided_slice %15 {offsets = [0, 24], sizes = [8, 8], strides = [1, 1]} : vector<8x32xf32> to vector<8x8xf32>
    %72 = vector.extract_strided_slice %16 {offsets = [0, 24], sizes = [8, 8], strides = [1, 1]} : vector<8x32xf32> to vector<8x8xf32>
    %cst_22 = arith.constant dense<0.000000e+00> : vector<8x8xf32>
    %73 = tpu.matmul %71, %72, %cst_22 {dimension_numbers = #tpu.dot_dimension_numbers<[1], [1], [0], [0], [0, 0, 1, 0], [], []>} : vector<8x8xf32>, vector<8x8xf32>, vector<8x8xf32> -> vector<8x8xf32>
    %cst_23 = arith.constant dense<0xFF800000> : vector<8xf32>
    %74 = vector.multi_reduction <maximumf>, %73, %cst_23 [1] : vector<8x8xf32> to vector<8xf32>
    %75 = vector.shape_cast %74 : vector<8xf32> to vector<8x1xf32>
    %76 = vector.broadcast %75 : vector<8x1xf32> to vector<8x8xf32>
    %77 = arith.subf %73, %76 : vector<8x8xf32>
    %78 = math.exp %77 : vector<8x8xf32>
    %cst_24 = arith.constant dense<0.000000e+00> : vector<8xf32>
    %79 = vector.multi_reduction <add>, %78, %cst_24 [1] : vector<8x8xf32> to vector<8xf32>
    %80 = vector.shape_cast %79 : vector<8xf32> to vector<8x1xf32>
    %81 = tpu.reciprocal %80 {approx = true} : vector<8x1xf32> -> vector<8x1xf32>
    %82 = vector.broadcast %81 : vector<8x1xf32> to vector<8x8xf32>
    %83 = arith.mulf %78, %82 : vector<8x8xf32>
    %84 = vector.extract_strided_slice %17 {offsets = [0, 24], sizes = [8, 8], strides = [1, 1]} : vector<8x32xf32> to vector<8x8xf32>
    %cst_25 = arith.constant dense<0.000000e+00> : vector<8x8xf32>
    %85 = tpu.matmul %83, %84, %cst_25 {dimension_numbers = #tpu.dot_dimension_numbers<[1], [0], [0], [1], [0, 0, 1, 1], [], []>} : vector<8x8xf32>, vector<8x8xf32>, vector<8x8xf32> -> vector<8x8xf32>
    %86 = vector.extract_strided_slice %14 {offsets = [24, 0], sizes = [8, 32], strides = [1, 1]} : vector<32x32xf32> to vector<8x32xf32>
    %cst_26 = arith.constant dense<0.000000e+00> : vector<8x32xf32>
    %87 = tpu.matmul %85, %86, %cst_26 {dimension_numbers = #tpu.dot_dimension_numbers<[1], [0], [0], [1], [0, 0, 1, 1], [], []>} : vector<8x8xf32>, vector<8x32xf32>, vector<8x32xf32> -> vector<8x32xf32>
    %88 = arith.addf %70, %87 : vector<8x32xf32>
    %89 = vector.extract_strided_slice %11 {offsets = [8, 0], sizes = [8, 32], strides = [1, 1]} : vector<16x32xf32> to vector<8x32xf32>
    %90 = vector.extract_strided_slice %12 {offsets = [8, 0], sizes = [8, 32], strides = [1, 1]} : vector<16x32xf32> to vector<8x32xf32>
    %91 = vector.extract_strided_slice %13 {offsets = [8, 0], sizes = [8, 32], strides = [1, 1]} : vector<16x32xf32> to vector<8x32xf32>
    %92 = vector.extract_strided_slice %89 {offsets = [0, 0], sizes = [8, 8], strides = [1, 1]} : vector<8x32xf32> to vector<8x8xf32>
    %93 = vector.extract_strided_slice %90 {offsets = [0, 0], sizes = [8, 8], strides = [1, 1]} : vector<8x32xf32> to vector<8x8xf32>
    %cst_27 = arith.constant dense<0.000000e+00> : vector<8x8xf32>
    %94 = tpu.matmul %92, %93, %cst_27 {dimension_numbers = #tpu.dot_dimension_numbers<[1], [1], [0], [0], [0, 0, 1, 0], [], []>} : vector<8x8xf32>, vector<8x8xf32>, vector<8x8xf32> -> vector<8x8xf32>
    %cst_28 = arith.constant dense<0xFF800000> : vector<8xf32>
    %95 = vector.multi_reduction <maximumf>, %94, %cst_28 [1] : vector<8x8xf32> to vector<8xf32>
    %96 = vector.shape_cast %95 : vector<8xf32> to vector<8x1xf32>
    %97 = vector.broadcast %96 : vector<8x1xf32> to vector<8x8xf32>
    %98 = arith.subf %94, %97 : vector<8x8xf32>
    %99 = math.exp %98 : vector<8x8xf32>
    %cst_29 = arith.constant dense<0.000000e+00> : vector<8xf32>
    %100 = vector.multi_reduction <add>, %99, %cst_29 [1] : vector<8x8xf32> to vector<8xf32>
    %101 = vector.shape_cast %100 : vector<8xf32> to vector<8x1xf32>
    %102 = tpu.reciprocal %101 {approx = true} : vector<8x1xf32> -> vector<8x1xf32>
    %103 = vector.broadcast %102 : vector<8x1xf32> to vector<8x8xf32>
    %104 = arith.mulf %99, %103 : vector<8x8xf32>
    %105 = vector.extract_strided_slice %91 {offsets = [0, 0], sizes = [8, 8], strides = [1, 1]} : vector<8x32xf32> to vector<8x8xf32>
    %cst_30 = arith.constant dense<0.000000e+00> : vector<8x8xf32>
    %106 = tpu.matmul %104, %105, %cst_30 {dimension_numbers = #tpu.dot_dimension_numbers<[1], [0], [0], [1], [0, 0, 1, 1], [], []>} : vector<8x8xf32>, vector<8x8xf32>, vector<8x8xf32> -> vector<8x8xf32>
    %107 = vector.extract_strided_slice %14 {offsets = [0, 0], sizes = [8, 32], strides = [1, 1]} : vector<32x32xf32> to vector<8x32xf32>
    %cst_31 = arith.constant dense<0.000000e+00> : vector<8x32xf32>
    %108 = tpu.matmul %106, %107, %cst_31 {dimension_numbers = #tpu.dot_dimension_numbers<[1], [0], [0], [1], [0, 0, 1, 1], [], []>} : vector<8x8xf32>, vector<8x32xf32>, vector<8x32xf32> -> vector<8x32xf32>
    %109 = vector.extract_strided_slice %89 {offsets = [0, 8], sizes = [8, 8], strides = [1, 1]} : vector<8x32xf32> to vector<8x8xf32>
    %110 = vector.extract_strided_slice %90 {offsets = [0, 8], sizes = [8, 8], strides = [1, 1]} : vector<8x32xf32> to vector<8x8xf32>
    %cst_32 = arith.constant dense<0.000000e+00> : vector<8x8xf32>
    %111 = tpu.matmul %109, %110, %cst_32 {dimension_numbers = #tpu.dot_dimension_numbers<[1], [1], [0], [0], [0, 0, 1, 0], [], []>} : vector<8x8xf32>, vector<8x8xf32>, vector<8x8xf32> -> vector<8x8xf32>
    %cst_33 = arith.constant dense<0xFF800000> : vector<8xf32>
    %112 = vector.multi_reduction <maximumf>, %111, %cst_33 [1] : vector<8x8xf32> to vector<8xf32>
    %113 = vector.shape_cast %112 : vector<8xf32> to vector<8x1xf32>
    %114 = vector.broadcast %113 : vector<8x1xf32> to vector<8x8xf32>
    %115 = arith.subf %111, %114 : vector<8x8xf32>
    %116 = math.exp %115 : vector<8x8xf32>
    %cst_34 = arith.constant dense<0.000000e+00> : vector<8xf32>
    %117 = vector.multi_reduction <add>, %116, %cst_34 [1] : vector<8x8xf32> to vector<8xf32>
    %118 = vector.shape_cast %117 : vector<8xf32> to vector<8x1xf32>
    %119 = tpu.reciprocal %118 {approx = true} : vector<8x1xf32> -> vector<8x1xf32>
    %120 = vector.broadcast %119 : vector<8x1xf32> to vector<8x8xf32>
    %121 = arith.mulf %116, %120 : vector<8x8xf32>
    %122 = vector.extract_strided_slice %91 {offsets = [0, 8], sizes = [8, 8], strides = [1, 1]} : vector<8x32xf32> to vector<8x8xf32>
    %cst_35 = arith.constant dense<0.000000e+00> : vector<8x8xf32>
    %123 = tpu.matmul %121, %122, %cst_35 {dimension_numbers = #tpu.dot_dimension_numbers<[1], [0], [0], [1], [0, 0, 1, 1], [], []>} : vector<8x8xf32>, vector<8x8xf32>, vector<8x8xf32> -> vector<8x8xf32>
    %124 = vector.extract_strided_slice %14 {offsets = [8, 0], sizes = [8, 32], strides = [1, 1]} : vector<32x32xf32> to vector<8x32xf32>
    %cst_36 = arith.constant dense<0.000000e+00> : vector<8x32xf32>
    %125 = tpu.matmul %123, %124, %cst_36 {dimension_numbers = #tpu.dot_dimension_numbers<[1], [0], [0], [1], [0, 0, 1, 1], [], []>} : vector<8x8xf32>, vector<8x32xf32>, vector<8x32xf32> -> vector<8x32xf32>
    %126 = arith.addf %108, %125 : vector<8x32xf32>
    %127 = vector.extract_strided_slice %89 {offsets = [0, 16], sizes = [8, 8], strides = [1, 1]} : vector<8x32xf32> to vector<8x8xf32>
    %128 = vector.extract_strided_slice %90 {offsets = [0, 16], sizes = [8, 8], strides = [1, 1]} : vector<8x32xf32> to vector<8x8xf32>
    %cst_37 = arith.constant dense<0.000000e+00> : vector<8x8xf32>
    %129 = tpu.matmul %127, %128, %cst_37 {dimension_numbers = #tpu.dot_dimension_numbers<[1], [1], [0], [0], [0, 0, 1, 0], [], []>} : vector<8x8xf32>, vector<8x8xf32>, vector<8x8xf32> -> vector<8x8xf32>
    %cst_38 = arith.constant dense<0xFF800000> : vector<8xf32>
    %130 = vector.multi_reduction <maximumf>, %129, %cst_38 [1] : vector<8x8xf32> to vector<8xf32>
    %131 = vector.shape_cast %130 : vector<8xf32> to vector<8x1xf32>
    %132 = vector.broadcast %131 : vector<8x1xf32> to vector<8x8xf32>
    %133 = arith.subf %129, %132 : vector<8x8xf32>
    %134 = math.exp %133 : vector<8x8xf32>
    %cst_39 = arith.constant dense<0.000000e+00> : vector<8xf32>
    %135 = vector.multi_reduction <add>, %134, %cst_39 [1] : vector<8x8xf32> to vector<8xf32>
    %136 = vector.shape_cast %135 : vector<8xf32> to vector<8x1xf32>
    %137 = tpu.reciprocal %136 {approx = true} : vector<8x1xf32> -> vector<8x1xf32>
    %138 = vector.broadcast %137 : vector<8x1xf32> to vector<8x8xf32>
    %139 = arith.mulf %134, %138 : vector<8x8xf32>
    %140 = vector.extract_strided_slice %91 {offsets = [0, 16], sizes = [8, 8], strides = [1, 1]} : vector<8x32xf32> to vector<8x8xf32>
    %cst_40 = arith.constant dense<0.000000e+00> : vector<8x8xf32>
    %141 = tpu.matmul %139, %140, %cst_40 {dimension_numbers = #tpu.dot_dimension_numbers<[1], [0], [0], [1], [0, 0, 1, 1], [], []>} : vector<8x8xf32>, vector<8x8xf32>, vector<8x8xf32> -> vector<8x8xf32>
    %142 = vector.extract_strided_slice %14 {offsets = [16, 0], sizes = [8, 32], strides = [1, 1]} : vector<32x32xf32> to vector<8x32xf32>
    %cst_41 = arith.constant dense<0.000000e+00> : vector<8x32xf32>
    %143 = tpu.matmul %141, %142, %cst_41 {dimension_numbers = #tpu.dot_dimension_numbers<[1], [0], [0], [1], [0, 0, 1, 1], [], []>} : vector<8x8xf32>, vector<8x32xf32>, vector<8x32xf32> -> vector<8x32xf32>
    %144 = arith.addf %126, %143 : vector<8x32xf32>
    %145 = vector.extract_strided_slice %89 {offsets = [0, 24], sizes = [8, 8], strides = [1, 1]} : vector<8x32xf32> to vector<8x8xf32>
    %146 = vector.extract_strided_slice %90 {offsets = [0, 24], sizes = [8, 8], strides = [1, 1]} : vector<8x32xf32> to vector<8x8xf32>
    %cst_42 = arith.constant dense<0.000000e+00> : vector<8x8xf32>
    %147 = tpu.matmul %145, %146, %cst_42 {dimension_numbers = #tpu.dot_dimension_numbers<[1], [1], [0], [0], [0, 0, 1, 0], [], []>} : vector<8x8xf32>, vector<8x8xf32>, vector<8x8xf32> -> vector<8x8xf32>
    %cst_43 = arith.constant dense<0xFF800000> : vector<8xf32>
    %148 = vector.multi_reduction <maximumf>, %147, %cst_43 [1] : vector<8x8xf32> to vector<8xf32>
    %149 = vector.shape_cast %148 : vector<8xf32> to vector<8x1xf32>
    %150 = vector.broadcast %149 : vector<8x1xf32> to vector<8x8xf32>
    %151 = arith.subf %147, %150 : vector<8x8xf32>
    %152 = math.exp %151 : vector<8x8xf32>
    %cst_44 = arith.constant dense<0.000000e+00> : vector<8xf32>
    %153 = vector.multi_reduction <add>, %152, %cst_44 [1] : vector<8x8xf32> to vector<8xf32>
    %154 = vector.shape_cast %153 : vector<8xf32> to vector<8x1xf32>
    %155 = tpu.reciprocal %154 {approx = true} : vector<8x1xf32> -> vector<8x1xf32>
    %156 = vector.broadcast %155 : vector<8x1xf32> to vector<8x8xf32>
    %157 = arith.mulf %152, %156 : vector<8x8xf32>
    %158 = vector.extract_strided_slice %91 {offsets = [0, 24], sizes = [8, 8], strides = [1, 1]} : vector<8x32xf32> to vector<8x8xf32>
    %cst_45 = arith.constant dense<0.000000e+00> : vector<8x8xf32>
    %159 = tpu.matmul %157, %158, %cst_45 {dimension_numbers = #tpu.dot_dimension_numbers<[1], [0], [0], [1], [0, 0, 1, 1], [], []>} : vector<8x8xf32>, vector<8x8xf32>, vector<8x8xf32> -> vector<8x8xf32>
    %160 = vector.extract_strided_slice %14 {offsets = [24, 0], sizes = [8, 32], strides = [1, 1]} : vector<32x32xf32> to vector<8x32xf32>
    %cst_46 = arith.constant dense<0.000000e+00> : vector<8x32xf32>
    %161 = tpu.matmul %159, %160, %cst_46 {dimension_numbers = #tpu.dot_dimension_numbers<[1], [0], [0], [1], [0, 0, 1, 1], [], []>} : vector<8x8xf32>, vector<8x32xf32>, vector<8x32xf32> -> vector<8x32xf32>
    %162 = arith.addf %144, %161 : vector<8x32xf32>
    %163 = tpu.concatenate %30, %47, %65, %83, %104, %121, %139, %157 in 1 : vector<8x8xf32>, vector<8x8xf32>, vector<8x8xf32>, vector<8x8xf32>, vector<8x8xf32>, vector<8x8xf32>, vector<8x8xf32>, vector<8x8xf32> -> vector<8x64xf32>
    %c0_47 = arith.constant 0 : index
    %c0_48 = arith.constant 0 : index
    %164 = vector.load %arg14[%c0_47, %c0_48] : memref<8x64xf32, #tpu.memory_space<vmem>>, vector<8x64xf32>
    tpu.vector_store %arg14[%c0_47, %c0_48], %163 {strides = array<i32>} : memref<8x64xf32, #tpu.memory_space<vmem>>, vector<8x64xf32>,
    %165 = tpu.concatenate %88, %162 in 0 : vector<8x32xf32>, vector<8x32xf32> -> vector<16x32xf32>
    %c0_49 = arith.constant 0 : index
    %c0_50 = arith.constant 0 : index
    %166 = vector.load %arg4[%c0_49, %c0_50] : memref<1x32xf32, #tpu.memory_space<vmem>>, vector<1x32xf32>
    %167 = vector.shape_cast %166 : vector<1x32xf32> to vector<32xf32>
    %168 = vector.shape_cast %167 : vector<32xf32> to vector<1x32xf32>
    %169 = vector.broadcast %168 : vector<1x32xf32> to vector<16x32xf32>
    %170 = arith.addf %165, %169 : vector<16x32xf32>
    %171 = arith.addf %3, %170 : vector<16x32xf32>
    %cst_51 = arith.constant dense<0.000000e+00> : vector<16xf32>
    %172 = vector.multi_reduction <add>, %171, %cst_51 [1] : vector<16x32xf32> to vector<16xf32>
    %173 = vector.shape_cast %172 : vector<16xf32> to vector<16x1xf32>
    %cst_52 = arith.constant 3.200000e+01 : f32
    %174 = vector.broadcast %cst_52 : f32 to vector<16x1xf32>
    %175 = arith.divf %173, %174 : vector<16x1xf32>
    %176 = vector.broadcast %175 : vector<16x1xf32> to vector<16x32xf32>
    %177 = arith.subf %171, %176 : vector<16x32xf32>
    %178 = arith.mulf %177, %177 : vector<16x32xf32>
    %cst_53 = arith.constant dense<0.000000e+00> : vector<16xf32>
    %179 = vector.multi_reduction <add>, %178, %cst_53 [1] : vector<16x32xf32> to vector<16xf32>
    %180 = vector.shape_cast %179 : vector<16xf32> to vector<16x1xf32>
    %cst_54 = arith.constant 3.200000e+01 : f32
    %181 = vector.broadcast %cst_54 : f32 to vector<16x1xf32>
    %182 = arith.divf %180, %181 : vector<16x1xf32>
    %183 = vector.broadcast %175 : vector<16x1xf32> to vector<16x32xf32>
    %184 = arith.subf %171, %183 : vector<16x32xf32>
    %cst_55 = arith.constant 9.99999974E-6 : f32
    %185 = vector.broadcast %cst_55 : f32 to vector<16x1xf32>
    %186 = arith.addf %182, %185 : vector<16x1xf32>
    %187 = math.rsqrt %186 : vector<16x1xf32>
    %188 = vector.broadcast %187 : vector<16x1xf32> to vector<16x32xf32>
    %189 = arith.mulf %184, %188 : vector<16x32xf32>
    %c0_56 = arith.constant 0 : index
    %c0_57 = arith.constant 0 : index
    %190 = vector.load %arg5[%c0_56, %c0_57] : memref<1x32xf32, #tpu.memory_space<vmem>>, vector<1x32xf32>
    %191 = vector.shape_cast %190 : vector<1x32xf32> to vector<32xf32>
    %192 = vector.shape_cast %191 : vector<32xf32> to vector<1x32xf32>
    %193 = vector.broadcast %192 : vector<1x32xf32> to vector<16x32xf32>
    %194 = arith.mulf %189, %193 : vector<16x32xf32>
    %c0_58 = arith.constant 0 : index
    %c0_59 = arith.constant 0 : index
    %195 = vector.load %arg6[%c0_58, %c0_59] : memref<1x32xf32, #tpu.memory_space<vmem>>, vector<1x32xf32>
    %196 = vector.shape_cast %195 : vector<1x32xf32> to vector<32xf32>
    %197 = vector.shape_cast %196 : vector<32xf32> to vector<1x32xf32>
    %198 = vector.broadcast %197 : vector<1x32xf32> to vector<16x32xf32>
    %199 = arith.addf %194, %198 : vector<16x32xf32>
    %c0_60 = arith.constant 0 : index
    %c0_61 = arith.constant 0 : index
    %200 = vector.load %arg7[%c0_60, %c0_61] : memref<32x64xf32, #tpu.memory_space<vmem>>, vector<32x64xf32>
    %cst_62 = arith.constant dense<0.000000e+00> : vector<16x64xf32>
    %201 = tpu.matmul %199, %200, %cst_62 {dimension_numbers = #tpu.dot_dimension_numbers<[1], [0], [0], [1], [0, 0, 1, 1], [], []>} : vector<16x32xf32>, vector<32x64xf32>, vector<16x64xf32> -> vector<16x64xf32>
    %c0_63 = arith.constant 0 : index
    %c0_64 = arith.constant 0 : index
    %202 = vector.load %arg8[%c0_63, %c0_64] : memref<1x64xf32, #tpu.memory_space<vmem>>, vector<1x64xf32>
    %203 = vector.shape_cast %202 : vector<1x64xf32> to vector<64xf32>
    %204 = vector.shape_cast %203 : vector<64xf32> to vector<1x64xf32>
    %205 = vector.broadcast %204 : vector<1x64xf32> to vector<16x64xf32>
    %206 = arith.addf %201, %205 : vector<16x64xf32>
    %cst_65 = arith.constant 0.000000e+00 : f32
    %207 = vector.broadcast %cst_65 : f32 to vector<16x64xf32>
    %208 = arith.maximumf %206, %207 : vector<16x64xf32>
    %c0_66 = arith.constant 0 : index
    %c0_67 = arith.constant 0 : index
    %209 = vector.load %arg9[%c0_66, %c0_67] : memref<64x32xf32, #tpu.memory_space<vmem>>, vector<64x32xf32>
    %cst_68 = arith.constant dense<0.000000e+00> : vector<16x32xf32>
    %210 = tpu.matmul %208, %209, %cst_68 {dimension_numbers = #tpu.dot_dimension_numbers<[1], [0], [0], [1], [0, 0, 1, 1], [], []>} : vector<16x64xf32>, vector<64x32xf32>, vector<16x32xf32> -> vector<16x32xf32>
    %c0_69 = arith.constant 0 : index
    %c0_70 = arith.constant 0 : index
    %211 = vector.load %arg10[%c0_69, %c0_70] : memref<1x32xf32, #tpu.memory_space<vmem>>, vector<1x32xf32>
    %212 = vector.shape_cast %211 : vector<1x32xf32> to vector<32xf32>
    %213 = vector.shape_cast %212 : vector<32xf32> to vector<1x32xf32>
    %214 = vector.broadcast %213 : vector<1x32xf32> to vector<16x32xf32>
    %215 = arith.addf %210, %214 : vector<16x32xf32>
    %216 = arith.addf %199, %215 : vector<16x32xf32>
    %cst_71 = arith.constant dense<0.000000e+00> : vector<16xf32>
    %217 = vector.multi_reduction <add>, %216, %cst_71 [1] : vector<16x32xf32> to vector<16xf32>
    %218 = vector.shape_cast %217 : vector<16xf32> to vector<16x1xf32>
    %cst_72 = arith.constant 3.200000e+01 : f32
    %219 = vector.broadcast %cst_72 : f32 to vector<16x1xf32>
    %220 = arith.divf %218, %219 : vector<16x1xf32>
    %221 = vector.broadcast %220 : vector<16x1xf32> to vector<16x32xf32>
    %222 = arith.subf %216, %221 : vector<16x32xf32>
    %223 = arith.mulf %222, %222 : vector<16x32xf32>
    %cst_73 = arith.constant dense<0.000000e+00> : vector<16xf32>
    %224 = vector.multi_reduction <add>, %223, %cst_73 [1] : vector<16x32xf32> to vector<16xf32>
    %225 = vector.shape_cast %224 : vector<16xf32> to vector<16x1xf32>
    %cst_74 = arith.constant 3.200000e+01 : f32
    %226 = vector.broadcast %cst_74 : f32 to vector<16x1xf32>
    %227 = arith.divf %225, %226 : vector<16x1xf32>
    %228 = vector.broadcast %220 : vector<16x1xf32> to vector<16x32xf32>
    %229 = arith.subf %216, %228 : vector<16x32xf32>
    %cst_75 = arith.constant 9.99999974E-6 : f32
    %230 = vector.broadcast %cst_75 : f32 to vector<16x1xf32>
    %231 = arith.addf %227, %230 : vector<16x1xf32>
    %232 = math.rsqrt %231 : vector<16x1xf32>
    %233 = vector.broadcast %232 : vector<16x1xf32> to vector<16x32xf32>
    %234 = arith.mulf %229, %233 : vector<16x32xf32>
    %c0_76 = arith.constant 0 : index
    %c0_77 = arith.constant 0 : index
    %235 = vector.load %arg11[%c0_76, %c0_77] : memref<1x32xf32, #tpu.memory_space<vmem>>, vector<1x32xf32>
    %236 = vector.shape_cast %235 : vector<1x32xf32> to vector<32xf32>
    %237 = vector.shape_cast %236 : vector<32xf32> to vector<1x32xf32>
    %238 = vector.broadcast %237 : vector<1x32xf32> to vector<16x32xf32>
    %239 = arith.mulf %234, %238 : vector<16x32xf32>
    %c0_78 = arith.constant 0 : index
    %c0_79 = arith.constant 0 : index
    %240 = vector.load %arg12[%c0_78, %c0_79] : memref<1x32xf32, #tpu.memory_space<vmem>>, vector<1x32xf32>
    %241 = vector.shape_cast %240 : vector<1x32xf32> to vector<32xf32>
    %242 = vector.shape_cast %241 : vector<32xf32> to vector<1x32xf32>
    %243 = vector.broadcast %242 : vector<1x32xf32> to vector<16x32xf32>
    %244 = arith.addf %239, %243 : vector<16x32xf32>
    %245 = vector.extract_strided_slice %244 {offsets = [0, 0], sizes = [8, 32], strides = [1, 1]} : vector<16x32xf32> to vector<8x32xf32>
    %246 = vector.extract_strided_slice %244 {offsets = [8, 0], sizes = [8, 32], strides = [1, 1]} : vector<16x32xf32> to vector<8x32xf32>
    %247 = tpu.concatenate %245, %246 in 1 : vector<8x32xf32>, vector<8x32xf32> -> vector<8x64xf32>
    %c0_80 = arith.constant 0 : index
    %c0_81 = arith.constant 0 : index
    %248 = vector.load %arg13[%c0_80, %c0_81] : memref<8x64xf32, #tpu.memory_space<vmem>>, vector<8x64xf32>
    tpu.vector_store %arg13[%c0_80, %c0_81], %247 {strides = array<i32>} : memref<8x64xf32, #tpu.memory_space<vmem>>, vector<8x64xf32>,
    return
  }
}

</mosaic_0001>

<bundles_post_ra>
// kernel: mul.9
= control target key start
LH: loop header
LB: loop body
LE: loop exit
PB: predicated region body
PF: predicated region fallthrough
CT: control target
= control target key end

     0   :  { %3 = vsyncpa [#allocation1], 0  ;;  %s44_s9 = smov [#allocation0]   ;;  %s69_s0 = inlined_call_operand.hbm [shape: f32[1,96], index: 0, kind: input, shape index: {}]   ;;  %s70_s1 = inlined_call_operand.vmem [shape: f32[1,96], index: 1, kind: input, shape index: {}]   ;;  %s71_s2 = inlined_call_operand.vmem [shape: f32[1,96], index: 2, kind: output, shape index: {}]  }
   0x1   :  { %s8_s10 = sshll.u32 %s44_s9, 4  ;;  %s9_s10 = int_to_ptr.vmem [resolvable:$true] %s8_s10 }
   0x2   :  { %s30_s11 = scalar_lea.vmem %s9_s10, 16  ;;  %s34_s12 = scalar_lea.vmem %s9_s10, 32 }
   0x3   :  { %p31_p0 = scmp.ne.s32.totalorder %s9_s10, %s30_s11  ;;  %p35_p1 = scmp.lt.s32.totalorder %s9_s10, %s9_s10 }
   0x4   :  { %p36_p2 = scmp.lt.s32.totalorder %s34_s12, %s30_s11 }
   0x6   :  { %p37_p3 = por %p36_p2, %p35_p1 }
   0x8   :  { %p38_p4 = pnand %p37_p3, %p31_p0 }
   0xa   :  { %41 = shalt.err (!%p38_p4)
}
   0xb   :  { %11 = dma.hbm_to_vmem [thread:$0]  %s69_s0, 16, %s9_s10, [#allocation1]  }
   0xc   :  { %42 = dma.done.wait [#allocation1], 16  }
   0xd   :  { %43 = vsyncadd [#allocation1], 4294967280  ;;  %v13_v0 = vld [vmem:[#allocation0] sm:$0x1] }
   0xe   :  { %v14_v1 = vld [vmem:[%s70_s1] sm:$0x1] }
   0xf   :  { %v17_v2 = vmul.f32 %v14_v1, %v13_v0 }
  0x11   :  { %19 = vst [vmem:[%s71_s2] sm:$0x1] %v17_v2 }
  0x12   :  { %20 = vsyncpa [#allocation1], 1 }

// kernel: transformer_encoder_layer.1
= control target key start
LH: loop header
LB: loop body
LE: loop exit
PB: predicated region body
PF: predicated region fallthrough
CT: control target
= control target key end

     0   :  { %vm62_vm0 = vcmask 261120   ;;  %s2728_s19 = smov 96   ;;  %v2729_v6 = vmov 0.0   ;;  %vm2730_vm1 = vmmov 0   ;;  %s2731_s24 = smov 88   ;;  %vm149_vm2 = vcmask 64512   ;;  %s3172_s0 = inlined_call_operand.vmem [shape: f32[8,64], index: 0, kind: input, shape index: {}]   ;;  %s3173_s1 = inlined_call_operand.vmem [shape: f32[32,96], index: 1, kind: input, shape index: {}]   ;;  %s3174_s2 = inlined_call_operand.vmem [shape: f32[1,96], index: 2, kind: input, shape index: {}]   ;;  %s3175_s3 = inlined_call_operand.vmem [shape: f32[32,32], index: 3, kind: input, shape index: {}]   ;;  %s3176_s4 = inlined_call_operand.vmem [shape: f32[1,32], index: 4, kind: input, shape index: {}]   ;;  %s3177_s5 = inlined_call_operand.vmem [shape: f32[1,32], index: 5, kind: input, shape index: {}]   ;;  %s3178_s6 = inlined_call_operand.vmem [shape: f32[1,32], index: 6, kind: input, shape index: {}]   ;;  %s3179_s7 = inlined_call_operand.vmem [shape: f32[32,64], index: 7, kind: input, shape index: {}]   ;;  %s3180_s9 = inlined_call_operand.vmem [shape: f32[64,32], index: 9, kind: input, shape index: {}]   ;;  %s3181_s8 = inlined_call_operand.vmem [shape: f32[1,64], index: 8, kind: input, shape index: {}]   ;;  %s3182_s10 = inlined_call_operand.vmem [shape: f32[1,32], index: 10, kind: input, shape index: {}]   ;;  %s3183_s14 = inlined_call_operand.vmem [shape: f32[8,64], index: 14, kind: output, shape index: {1}]   ;;  %s3184_s11 = inlined_call_operand.vmem [shape: f32[1,32], index: 11, kind: input, shape index: {}]   ;;  %s3185_s12 = inlined_call_operand.vmem [shape: f32[1,32], index: 12, kind: input, shape index: {}]   ;;  %s3186_s13 = inlined_call_operand.vmem [shape: f32[8,64], index: 13, kind: output, shape index: {0}]  }
   0x1   :  { %v2823_v0 = vld [vmem:[%s3172_s0] sm:$0xff]  ;;  %v54_v1 = vld [vmem:[%s3173_s1 + $0x18] sm:$0xff]  ;;  %v53_v2 = vld [vmem:[%s3173_s1 + $0x10] sm:$0xff]  ;;  %2526 = vmatprep.subr.mxu1 %v2729_v6  ;;  %2528 = vmatprep.mubr.msk.f32.mxu1 %vm2730_vm1, %v2729_v6  ;;  %s2732_s25 = smov 120   ;;  %s2734_s26 = smov 80   ;;  %vm2086_vm3 = vcmask 523264  }
   0x2   :  { %48 = vrot.lane.b32.xlu0 %v2823_v0, %s2728_s19  ;;  %2510 = vmatprep.subr.mxu0 %v54_v1  ;;  %v52_v3 = vld [vmem:[%s3173_s1 + $0x8] sm:$0xff]  ;;  %v51_v4 = vld [vmem:[%s3173_s1] sm:$0xff]  ;;  %s2735_s27 = smov 112   ;;  %s2736_s28 = smov 56   ;;  %vm2075_vm4 = vcmask 130048   ;;  %vm2077_vm5 = vcmask 195584  }
   0x3   :  { %2511 = vmatpush3.msra.mxu0 %v54_v1  ;;  %2518 = vmatprep.mubr.msk.f32.mxu0 %vm62_vm0, %v2823_v0  ;;  %v2394_v7 = vld [vmem:[%s3174_s2] ss:$0 sm:$0xff]  ;;  %s2733_s2 = smov 64   ;;  %v2910_v40 = vld [vmem:[%s3175_s3 + $0x8] sm:$0xff]  ;;  %s2737_s17 = smov 48   ;;  %vm2080_vm6 = vcmask 326656  }
   0x4   :  { %2512 = vmatprep.subr.mxu0 %v53_v2  ;;  %v2904_v39 = vld [vmem:[%s3175_s3] sm:$0xff]  ;;  %s2738_s18 = smov 104   ;;  %s2739_s20 = smov 72   ;;  %vm2082_vm7 = vcmask 392192   ;;  %vm2084_vm8 = vcmask 457728  }
   0x5   :  { %2513 = vmatpush3.msra.mxu0 %v53_v2  ;;  %s2740_s22 = smov 40   ;;  %s2744_s16 = smov 32  }
   0x6   :  { %2514 = vmatprep.subr.mxu0 %v52_v3 }
   0x7   :  { %2515 = vmatpush3.msra.mxu0 %v52_v3  ;;  %v2949_v3 = vld [vmem:[%s3175_s3 + $0x10] sm:$0xff] }
   0x8   :  { %2516 = vmatprep.subr.mxu0 %v51_v4 }
   0x9   :  { %2517 = vmatpush3.msra.mxu0 %v51_v4 }
   0xa   :  { %2521 = vmatprep.subr.mxu0 %v2729_v6 }
  0x74   :  { %v2841_v5 = vpop.permute.xlu0 %48 }
  0x75   :  { %2519 = vmatmul.mubr.msk.f32.vlgmr.msra.gmra.mxu0 %vm62_vm0, %v2841_v5 }
  0x76   :  { %2523 = vmatprep.mubr.msk.f32.mxu0 %vm2730_vm1, %v2729_v6 }
 0x135   :  { %v2520_v8 = vpop.f32.mrf.mxu0 }
 0x136   :  { %v2854_v9 = vadd.f32 %v2520_v8, %v2394_v7 }
 0x137   :  { %v133_v10 = vpop.f32.mrf.mxu0 }
 0x138   :  { %v2856_v11 = vadd.f32 %v2394_v7, %v133_v10 }
 0x13a   :  { %313 = vrot.lane.b32.xlu1 %v2856_v11, %s2731_s24  ;;  %147 = vrot.lane.b32.xlu0 %v2856_v11, %s2728_s19 }
 0x13e   :  { %311 = vrot.lane.b32.xlu1 %v2856_v11, %s2732_s25 }
 0x1ac   :  { %v148_v12 = vpop.permute.xlu0 %147  ;;  %v314_v13 = vpop.permute.xlu1 %313 }
 0x1ad   :  { %2522 = vmatpush3.xpose.msk.msra.mxu0 %vm149_vm2, %v148_v12 }
 0x1ae   :  { %2531 = vmatprep.subr.mxu0 %v2729_v6 }
 0x1b0   :  { %2524 = vmatmul.mubr.msk.f32.vlgmr.msra.gmra.mxu0 %vm149_vm2, %v2856_v11  ;;  %v312_v14 = vpop.permute.xlu1 %311 }
 0x1b1   :  { %2532 = vmatpush3.xpose.msk.msra.mxu0 %vm149_vm2, %v314_v13  ;;  %2533 = vmatprep.mubr.msk.f32.mxu0 %vm2730_vm1, %v2729_v6 }
 0x1b2   :  { %2541 = vmatprep.subr.mxu0 %v2729_v6 }
 0x1b4   :  { %2534 = vmatmul.mubr.msk.f32.vlgmr.msra.gmra.mxu0 %vm149_vm2, %v312_v14 }
 0x1b5   :  { %2543 = vmatprep.mubr.msk.f32.mxu0 %vm2730_vm1, %v2729_v6  ;;  %2542 = vmatpush3.msra.mxu0 %v2910_v40 }
 0x1b6   :  { %2551 = vmatprep.subr.mxu0 %v2729_v6 }
 0x270   :  { %v220_v15 = vpop.f32.mrf.mxu0 }
 0x271   :  { %v224_v16 = vsel %vm149_vm2, %v220_v15, -inf }
 0x272   :  { %225 = vmax.xlane.f32.xlu0 %v224_v16  ;;  %v2525_v17 = vpop.f32.mrf.mxu0 }
 0x274   :  { %v385_v18 = vpop.f32.mrf.mxu0 }
 0x275   :  { %v389_v19 = vsel %vm149_vm2, %v385_v18, -inf }
 0x276   :  { %390 = vmax.xlane.f32.xlu1 %v389_v19  ;;  %v2535_v20 = vpop.f32.mrf.mxu0 }
 0x287   :  { %235 = vrot.lane.b32.xlu1 %v2856_v11, %s2733_s2 }
 0x28b   :  { %624 = vrot.lane.b32.xlu1 %v2856_v11, %s2734_s26 }
 0x28f   :  { %622 = vrot.lane.b32.xlu1 %v2856_v11, %s2735_s27 }
 0x2fb   :  { %v226_v21 = vpop.xlane.xlu0 %225 }
 0x2fc   :  { %v227_v22 = vsub.f32 %v220_v15, %v226_v21 }
 0x2fe   :  { %v228_v23 = vmul.f32 1.442695, %v227_v22 }
 0x2ff   :  { %v391_v24 = vpop.xlane.xlu1 %390 }
 0x300   :  { %2688 = vpow2.f32 %v228_v23  ;;  %v392_v25 = vsub.f32 %v385_v18, %v391_v24 }
 0x302   :  { %v393_v26 = vmul.f32 1.442695, %v392_v25 }
 0x303   :  { %v236_v27 = vpop.permute.xlu1 %235 }
 0x304   :  { %2690 = vpow2.f32 %v393_v26  ;;  %2527 = vmatpush3.msra.mxu1 %v236_v27  ;;  %v2989_v27 = vld [vmem:[%s3175_s3 + $0x18] sm:$0xff] }
 0x305   :  { %2536 = vmatprep.subr.mxu1 %v2729_v6 }
 0x307   :  { %v625_v42 = vpop.permute.xlu1 %624 }
 0x30b   :  { %v623_v46 = vpop.permute.xlu1 %622 }
 0x30d   :  { %v2689_v28 = vpop.eup %2688 }
 0x30e   :  { %v230_v29 = vsel %vm149_vm2, %v2689_v28, 0.0 }
 0x30f   :  { %231 = vadd.xlane.f32.xlu0 %v230_v29 }
 0x311   :  { %v2691_v30 = vpop.eup %2690 }
 0x312   :  { %v395_v31 = vsel %vm149_vm2, %v2691_v30, 0.0 }
 0x313   :  { %396 = vadd.xlane.f32.xlu0 %v395_v31 }
 0x329   :  { %400 = vrot.lane.b32.xlu0 %v2856_v11, %s2736_s28 }
 0x398   :  { %v232_v32 = vpop.xlane.xlu0 %231 }
 0x399   :  { %2692 = vrcp.f32 %v232_v32 }
 0x39c   :  { %v397_v33 = vpop.xlane.xlu0 %396 }
 0x39d   :  { %2694 = vrcp.f32 %v397_v33 }
 0x3a0   :  { %v401_v36 = vpop.permute.xlu0 %400 }
 0x3a6   :  { %v2693_v34 = vpop.eup %2692 }
 0x3a7   :  { %v2888_v35 = vmul.f32 %v2693_v34, %v2689_v28 }
 0x3a9   :  { %2529 = vmatmul.mubr.msk.f32.vlgmr.msra.gmra.mxu1 %vm149_vm2, %v2888_v35 }
 0x3aa   :  { %v2695_v37 = vpop.eup %2694  ;;  %2537 = vmatpush3.msra.mxu1 %v401_v36  ;;  %2538 = vmatprep.mubr.msk.f32.mxu1 %vm2730_vm1, %v2729_v6 }
 0x3ab   :  { %v2894_v38 = vmul.f32 %v2695_v37, %v2691_v30  ;;  %2546 = vmatprep.subr.mxu1 %v2729_v6 }
 0x3ad   :  { %2539 = vmatmul.mubr.msk.f32.vlgmr.msra.gmra.mxu1 %vm149_vm2, %v2894_v38 }
 0x3ae   :  { %2548 = vmatprep.mubr.msk.f32.mxu1 %vm2730_vm1, %v2729_v6  ;;  %2547 = vmatpush3.msra.mxu1 %v2904_v39 }
 0x3af   :  { %2556 = vmatprep.subr.mxu1 %v2729_v6 }
 0x469   :  { %v307_v41 = vpop.f32.mrf.mxu1 }
 0x46a   :  { %2549 = vmatmul.mubr.msk.f32.vlgmr.msra.gmra.mxu1 %vm149_vm2, %v307_v41 }
 0x46b   :  { %v2530_v43 = vpop.f32.mrf.mxu1  ;;  %2558 = vmatprep.mubr.msk.f32.mxu1 %vm2730_vm1, %v2729_v6 }
 0x46d   :  { %v472_v44 = vpop.f32.mrf.mxu1 }
 0x46e   :  { %2544 = vmatmul.mubr.msk.f32.vlgmr.msra.gmra.mxu0 %vm149_vm2, %v472_v44 }
 0x46f   :  { %2552 = vmatpush3.xpose.msk.msra.mxu0 %vm149_vm2, %v625_v42  ;;  %v2540_v45 = vpop.f32.mrf.mxu1  ;;  %2553 = vmatprep.mubr.msk.f32.mxu0 %vm2730_vm1, %v2729_v6 }
 0x470   :  { %2561 = vmatprep.subr.mxu0 %v2729_v6 }
 0x472   :  { %2554 = vmatmul.mubr.msk.f32.vlgmr.msra.gmra.mxu0 %vm149_vm2, %v623_v46 }
 0x473   :  { %2563 = vmatprep.mubr.msk.f32.mxu0 %vm2730_vm1, %v2729_v6  ;;  %2562 = vmatpush3.msra.mxu0 %v2949_v3 }
 0x474   :  { %2571 = vmatprep.subr.mxu0 %v2729_v6 }
 0x52a   :  { %v618_v47 = vpop.f32.mrf.mxu1 }
 0x52c   :  { %v2550_v48 = vpop.f32.mrf.mxu1 }
 0x52e   :  { %v545_v49 = vpop.f32.mrf.mxu0 }
 0x52f   :  { %v619_v50 = vadd.f32 %v618_v47, %v545_v49 }
 0x530   :  { %v2545_v51 = vpop.f32.mrf.mxu0 }
 0x532   :  { %v696_v52 = vpop.f32.mrf.mxu0 }
 0x533   :  { %v700_v53 = vsel %vm149_vm2, %v696_v52, -inf }
 0x534   :  { %701 = vmax.xlane.f32.xlu0 %v700_v53  ;;  %v2555_v54 = vpop.f32.mrf.mxu0 }
 0x54a   :  { %711 = vrot.lane.b32.xlu0 %v2856_v11, %s2737_s17 }
 0x54e   :  { %861 = vrot.lane.b32.xlu0 %v2856_v11, %s2738_s18 }
 0x5bd   :  { %v702_v55 = vpop.xlane.xlu0 %701 }
 0x5be   :  { %v703_v56 = vsub.f32 %v696_v52, %v702_v55 }
 0x5c0   :  { %v704_v57 = vmul.f32 1.442695, %v703_v56 }
 0x5c1   :  { %v712_v58 = vpop.permute.xlu0 %711 }
 0x5c2   :  { %2696 = vpow2.f32 %v704_v57  ;;  %2557 = vmatpush3.msra.mxu1 %v712_v58 }
 0x5c3   :  { %2566 = vmatprep.subr.mxu1 %v2729_v6 }
 0x5c5   :  { %v862_v2 = vpop.permute.xlu0 %861 }
 0x5cf   :  { %v2697_v59 = vpop.eup %2696 }
 0x5d0   :  { %v706_v60 = vsel %vm149_vm2, %v2697_v59, 0.0 }
 0x5d1   :  { %707 = vadd.xlane.f32.xlu1 %v706_v60 }
 0x5e2   :  { %863 = vrot.lane.b32.xlu1 %v2856_v11, %s2739_s20 }
 0x65a   :  { %v708_v61 = vpop.xlane.xlu1 %707 }
 0x65b   :  { %2698 = vrcp.f32 %v708_v61 }
 0x65e   :  { %v864_v1 = vpop.permute.xlu1 %863 }
 0x668   :  { %v2699_v62 = vpop.eup %2698 }
 0x669   :  { %v2935_v63 = vmul.f32 %v2699_v62, %v2697_v59 }
 0x66b   :  { %2559 = vmatmul.mubr.msk.f32.vlgmr.msra.gmra.mxu1 %vm149_vm2, %v2935_v63 }
 0x66c   :  { %2567 = vmatpush3.xpose.msk.msra.mxu1 %vm149_vm2, %v864_v1  ;;  %2568 = vmatprep.mubr.msk.f32.mxu1 %vm2730_vm1, %v2729_v6 }
 0x66d   :  { %2576 = vmatprep.subr.mxu1 %v2729_v6 }
 0x66f   :  { %2569 = vmatmul.mubr.msk.f32.vlgmr.msra.gmra.mxu1 %vm149_vm2, %v862_v2 }
 0x670   :  { %2578 = vmatprep.mubr.msk.f32.mxu1 %vm2730_vm1, %v2729_v6  ;;  %2577 = vmatpush3.msra.mxu1 %v2989_v27 }
 0x671   :  { %2586 = vmatprep.subr.mxu1 %v2729_v6 }
 0x72b   :  { %v783_v4 = vpop.f32.mrf.mxu1 }
 0x72c   :  { %2564 = vmatmul.mubr.msk.f32.vlgmr.msra.gmra.mxu0 %vm149_vm2, %v783_v4 }
 0x72d   :  { %v2560_v7 = vpop.f32.mrf.mxu1  ;;  %2573 = vmatprep.mubr.msk.f32.mxu0 %vm2730_vm1, %v2729_v6 }
 0x72f   :  { %v935_v8 = vpop.f32.mrf.mxu1 }
 0x730   :  { %v939_v10 = vsel %vm149_vm2, %v935_v8, -inf }
 0x731   :  { %940 = vmax.xlane.f32.xlu1 %v939_v10  ;;  %v2570_v12 = vpop.f32.mrf.mxu1 }
 0x742   :  { %1101 = vrot.lane.b32.xlu1 %v2854_v9, %s2728_s19 }
 0x746   :  { %1266 = vrot.lane.b32.xlu1 %v2854_v9, %s2731_s24 }
 0x7ba   :  { %v941_v13 = vpop.xlane.xlu1 %940 }
 0x7bb   :  { %v942_v14 = vsub.f32 %v935_v8, %v941_v13 }
 0x7bd   :  { %v943_v15 = vmul.f32 1.442695, %v942_v14 }
 0x7be   :  { %v1102_v24 = vpop.permute.xlu1 %1101 }
 0x7bf   :  { %2700 = vpow2.f32 %v943_v15 }
 0x7cc   :  { %v2701_v16 = vpop.eup %2700 }
 0x7cd   :  { %v945_v17 = vsel %vm149_vm2, %v2701_v16, 0.0 }
 0x7ce   :  { %946 = vadd.xlane.f32.xlu0 %v945_v17 }
 0x7e4   :  { %950 = vrot.lane.b32.xlu0 %v2856_v11, %s2740_s22  ;;  %v1267_v11 = vpop.permute.xlu1 %1266 }
 0x7e8   :  { %1264 = vrot.lane.b32.xlu0 %v2854_v9, %s2732_s25 }
 0x7ec   :  { %v856_v18 = vpop.f32.mrf.mxu0 }
 0x7ed   :  { %v860_v19 = vadd.f32 %v856_v18, %v619_v50 }
 0x7ee   :  { %v2565_v20 = vpop.f32.mrf.mxu0 }
 0x857   :  { %v947_v21 = vpop.xlane.xlu0 %946 }
 0x858   :  { %2702 = vrcp.f32 %v947_v21 }
 0x85b   :  { %v951_v22 = vpop.permute.xlu0 %950 }
 0x85c   :  { %2572 = vmatpush3.msra.mxu0 %v951_v22 }
 0x85d   :  { %2581 = vmatprep.subr.mxu0 %v2729_v6 }
 0x85f   :  { %v1265_v26 = vpop.permute.xlu0 %1264 }
 0x865   :  { %v2703_v23 = vpop.eup %2702 }
 0x866   :  { %v2967_v25 = vmul.f32 %v2703_v23, %v2701_v16 }
 0x868   :  { %2574 = vmatmul.mubr.msk.f32.vlgmr.msra.gmra.mxu0 %vm149_vm2, %v2967_v25 }
 0x869   :  { %2582 = vmatpush3.xpose.msk.msra.mxu0 %vm149_vm2, %v1102_v24  ;;  %2583 = vmatprep.mubr.msk.f32.mxu0 %vm2730_vm1, %v2729_v6 }
 0x86a   :  { %2591 = vmatprep.subr.mxu0 %v2729_v6 }
 0x86c   :  { %2584 = vmatmul.mubr.msk.f32.vlgmr.msra.gmra.mxu0 %vm149_vm2, %v2854_v9 }
 0x86d   :  { %2592 = vmatpush3.xpose.msk.msra.mxu0 %vm149_vm2, %v1267_v11  ;;  %2593 = vmatprep.mubr.msk.f32.mxu0 %vm2730_vm1, %v2729_v6 }
 0x86e   :  { %2601 = vmatprep.subr.mxu0 %v2729_v6 }
 0x870   :  { %2594 = vmatmul.mubr.msk.f32.vlgmr.msra.gmra.mxu0 %vm149_vm2, %v1265_v26 }
 0x871   :  { %2602 = vmatpush3.msra.mxu0 %v2910_v40  ;;  %2603 = vmatprep.mubr.msk.f32.mxu0 %vm2730_vm1, %v2729_v6 }
 0x872   :  { %2611 = vmatprep.subr.mxu0 %v2729_v6 }
 0x928   :  { %v1022_v28 = vpop.f32.mrf.mxu0 }
 0x929   :  { %2579 = vmatmul.mubr.msk.f32.vlgmr.msra.gmra.mxu1 %vm149_vm2, %v1022_v28 }
 0x92a   :  { %v2575_v29 = vpop.f32.mrf.mxu0  ;;  %2588 = vmatprep.mubr.msk.f32.mxu1 %vm2730_vm1, %v2729_v6 }
 0x92c   :  { %v1173_v30 = vpop.f32.mrf.mxu0 }
 0x92d   :  { %v1177_v31 = vsel %vm149_vm2, %v1173_v30, -inf }
 0x92e   :  { %1178 = vmax.xlane.f32.xlu1 %v1177_v31  ;;  %v2585_v32 = vpop.f32.mrf.mxu0 }
 0x930   :  { %v1338_v33 = vpop.f32.mrf.mxu0 }
 0x931   :  { %v1342_v34 = vsel %vm149_vm2, %v1338_v33, -inf }
 0x932   :  { %1343 = vmax.xlane.f32.xlu0 %v1342_v34  ;;  %v2595_v36 = vpop.f32.mrf.mxu0 }
 0x933   :  { %v2429_v36 = vld [vmem:[%s3176_s4] ss:$0 sm:$0xff] }
 0x9b7   :  { %v1179_v37 = vpop.xlane.xlu1 %1178 }
 0x9b8   :  { %v1180_v40 = vsub.f32 %v1173_v30, %v1179_v37 }
 0x9ba   :  { %v1181_v41 = vmul.f32 1.442695, %v1180_v40 }
 0x9bb   :  { %v1344_v42 = vpop.xlane.xlu0 %1343 }
 0x9bc   :  { %2704 = vpow2.f32 %v1181_v41  ;;  %v1345_v43 = vsub.f32 %v1338_v33, %v1344_v42 }
 0x9be   :  { %v1346_v44 = vmul.f32 1.442695, %v1345_v43 }
 0x9c0   :  { %2706 = vpow2.f32 %v1346_v44 }
 0x9c9   :  { %v2705_v45 = vpop.eup %2704 }
 0x9ca   :  { %v1183_v46 = vsel %vm149_vm2, %v2705_v45, 0.0 }
 0x9cb   :  { %1184 = vadd.xlane.f32.xlu0 %v1183_v46 }
 0x9cd   :  { %v2707_v47 = vpop.eup %2706 }
 0x9ce   :  { %v1348_v48 = vsel %vm149_vm2, %v2707_v47, 0.0 }
 0x9cf   :  { %1349 = vadd.xlane.f32.xlu1 %v1348_v48 }
 0x9e0   :  { %1353 = vrot.lane.b32.xlu1 %v2854_v9, %s2736_s28 }
 0x9e1   :  { %1188 = vrot.lane.b32.xlu0 %v2854_v9, %s2733_s2 }
 0x9e4   :  { %1577 = vrot.lane.b32.xlu1 %v2854_v9, %s2734_s26 }
 0x9e5   :  { %1575 = vrot.lane.b32.xlu0 %v2854_v9, %s2735_s27 }
 0x9e9   :  { %v1095_v49 = vpop.f32.mrf.mxu1 }
 0x9ea   :  { %v3008_v50 = vadd.f32 %v1095_v49, %v860_v19 }
 0x9eb   :  { %v2580_v51 = vpop.f32.mrf.mxu1 }
 0xa54   :  { %v1185_v52 = vpop.xlane.xlu0 %1184 }
 0xa55   :  { %2708 = vrcp.f32 %v1185_v52 }
 0xa58   :  { %v1350_v53 = vpop.xlane.xlu1 %1349  ;;  %v1189_v54 = vpop.permute.xlu0 %1188 }
 0xa59   :  { %2710 = vrcp.f32 %v1350_v53  ;;  %2587 = vmatpush3.msra.mxu1 %v1189_v54 }
 0xa5a   :  { %2596 = vmatprep.subr.mxu1 %v2729_v6 }
 0xa5c   :  { %v1354_v57 = vpop.permute.xlu1 %1353 }
 0xa60   :  { %v1578_v1 = vpop.permute.xlu1 %1577 }
 0xa62   :  { %v2709_v55 = vpop.eup %2708 }
 0xa63   :  { %v3011_v56 = vmul.f32 %v2709_v55, %v2705_v45 }
 0xa65   :  { %2589 = vmatmul.mubr.msk.f32.vlgmr.msra.gmra.mxu1 %vm149_vm2, %v3011_v56 }
 0xa66   :  { %v2711_v58 = vpop.eup %2710  ;;  %2597 = vmatpush3.msra.mxu1 %v1354_v57  ;;  %2598 = vmatprep.mubr.msk.f32.mxu1 %vm2730_vm1, %v2729_v6 }
 0xa67   :  { %v3017_v59 = vmul.f32 %v2711_v58, %v2707_v47  ;;  %2606 = vmatprep.subr.mxu1 %v2729_v6 }
 0xa69   :  { %2599 = vmatmul.mubr.msk.f32.vlgmr.msra.gmra.mxu1 %vm149_vm2, %v3017_v59 }
 0xa6a   :  { %2607 = vmatpush3.msra.mxu1 %v2904_v39  ;;  %2608 = vmatprep.mubr.msk.f32.mxu1 %vm2730_vm1, %v2729_v6  ;;  %v1576_v39 = vpop.permute.xlu0 %1575 }
 0xa6b   :  { %2616 = vmatprep.subr.mxu1 %v2729_v6 }
 0xb25   :  { %v1260_v60 = vpop.f32.mrf.mxu1 }
 0xb26   :  { %2609 = vmatmul.mubr.msk.f32.vlgmr.msra.gmra.mxu1 %vm149_vm2, %v1260_v60 }
 0xb27   :  { %v2590_v61 = vpop.f32.mrf.mxu1  ;;  %2618 = vmatprep.mubr.msk.f32.mxu1 %vm2730_vm1, %v2729_v6 }
 0xb29   :  { %v1425_v62 = vpop.f32.mrf.mxu1 }
 0xb2a   :  { %2604 = vmatmul.mubr.msk.f32.vlgmr.msra.gmra.mxu0 %vm149_vm2, %v1425_v62 }
 0xb2b   :  { %2612 = vmatpush3.xpose.msk.msra.mxu0 %vm149_vm2, %v1578_v1  ;;  %v2600_v2 = vpop.f32.mrf.mxu1  ;;  %2613 = vmatprep.mubr.msk.f32.mxu0 %vm2730_vm1, %v2729_v6 }
 0xb2c   :  { %2621 = vmatprep.subr.mxu0 %v2729_v6 }
 0xb2e   :  { %2614 = vmatmul.mubr.msk.f32.vlgmr.msra.gmra.mxu0 %vm149_vm2, %v1576_v39 }
 0xb2f   :  { %2622 = vmatpush3.msra.mxu0 %v2949_v3  ;;  %2623 = vmatprep.mubr.msk.f32.mxu0 %vm2730_vm1, %v2729_v6 }
 0xb30   :  { %2631 = vmatprep.subr.mxu0 %v2729_v6 }
 0xbe6   :  { %v1571_v4 = vpop.f32.mrf.mxu1 }
 0xbe8   :  { %v2610_v7 = vpop.f32.mrf.mxu1 }
 0xbea   :  { %v1498_v8 = vpop.f32.mrf.mxu0 }
 0xbeb   :  { %v1572_v10 = vadd.f32 %v1571_v4, %v1498_v8 }
 0xbec   :  { %v2605_v12 = vpop.f32.mrf.mxu0 }
 0xbee   :  { %v1649_v13 = vpop.f32.mrf.mxu0 }
 0xbef   :  { %v1653_v14 = vsel %vm149_vm2, %v1649_v13, -inf }
 0xbf0   :  { %1654 = vmax.xlane.f32.xlu1 %v1653_v14  ;;  %v2615_v15 = vpop.f32.mrf.mxu0  ;;  %v2431_v14 = vld [vmem:[%s3178_s6] ss:$0 sm:$0xff]  ;;  %s2742_s6 = smov 16  }
 0xc01   :  { %1816 = vrot.lane.b32.xlu1 %v2854_v9, %s2739_s20 }
 0xc05   :  { %1814 = vrot.lane.b32.xlu1 %v2854_v9, %s2738_s18 }
 0xc79   :  { %v1655_v3 = vpop.xlane.xlu1 %1654 }
 0xc7a   :  { %v1656_v16 = vsub.f32 %v1649_v13, %v1655_v3 }
 0xc7c   :  { %v1657_v17 = vmul.f32 1.442695, %v1656_v16  ;;  %v2147_v16 = vld [vmem:[%s3179_s7 + $0x18] sm:$0xff] }
 0xc7d   :  { %v1817_v23 = vpop.permute.xlu1 %1816 }
 0xc7e   :  { %2712 = vpow2.f32 %v1657_v17  ;;  %v2146_v17 = vld [vmem:[%s3179_s7 + $0x10] sm:$0xff] }
 0xc81   :  { %v1815_v11 = vpop.permute.xlu1 %1814 }
 0xc8b   :  { %v2713_v18 = vpop.eup %2712 }
 0xc8c   :  { %v1659_v19 = vsel %vm149_vm2, %v2713_v18, 0.0 }
 0xc8d   :  { %1660 = vadd.xlane.f32.xlu0 %v1659_v19  ;;  %v2144_v19 = vld [vmem:[%s3179_s7] sm:$0xff] }
 0xca3   :  { %1664 = vrot.lane.b32.xlu0 %v2854_v9, %s2737_s17 }
 0xd16   :  { %v1661_v20 = vpop.xlane.xlu0 %1660 }
 0xd17   :  { %2714 = vrcp.f32 %v1661_v20  ;;  %v2245_v20 = vld [vmem:[%s3180_s9 + $0x38] sm:$0xff] }
 0xd1a   :  { %v1665_v21 = vpop.permute.xlu0 %1664 }
 0xd1b   :  { %2617 = vmatpush3.msra.mxu1 %v1665_v21  ;;  %v2244_v21 = vld [vmem:[%s3180_s9 + $0x30] sm:$0xff] }
 0xd1c   :  { %2626 = vmatprep.subr.mxu1 %v2729_v6 }
 0xd24   :  { %v2715_v22 = vpop.eup %2714 }
 0xd25   :  { %v3048_v24 = vmul.f32 %v2715_v22, %v2713_v18  ;;  %v2145_v18 = vld [vmem:[%s3179_s7 + $0x8] sm:$0xff] }
 0xd26   :  { %v2243_v22 = vld [vmem:[%s3180_s9 + $0x28] sm:$0xff] }
 0xd27   :  { %2619 = vmatmul.mubr.msk.f32.vlgmr.msra.gmra.mxu1 %vm149_vm2, %v3048_v24 }
 0xd28   :  { %2627 = vmatpush3.xpose.msk.msra.mxu1 %vm149_vm2, %v1817_v23  ;;  %2628 = vmatprep.mubr.msk.f32.mxu1 %vm2730_vm1, %v2729_v6  ;;  %v2242_v23 = vld [vmem:[%s3180_s9 + $0x20] sm:$0xff] }
 0xd29   :  { %2636 = vmatprep.subr.mxu1 %v2729_v6 }
 0xd2b   :  { %2629 = vmatmul.mubr.msk.f32.vlgmr.msra.gmra.mxu1 %vm149_vm2, %v1815_v11 }
 0xd2c   :  { %2637 = vmatpush3.msra.mxu1 %v2989_v27  ;;  %2638 = vmatprep.mubr.msk.f32.mxu1 %vm2730_vm1, %v2729_v6 }
 0xd2d   :  { %2652 = vmatprep.subr.mxu1 %v2245_v20 }
 0xde7   :  { %v1736_v26 = vpop.f32.mrf.mxu1 }
 0xde8   :  { %2624 = vmatmul.mubr.msk.f32.vlgmr.msra.gmra.mxu0 %vm149_vm2, %v1736_v26 }
 0xde9   :  { %v2620_v28 = vpop.f32.mrf.mxu1  ;;  %2633 = vmatprep.mubr.msk.f32.mxu0 %vm2730_vm1, %v2729_v6  ;;  %v2095_v6 = vadd.f32 %v2429_v36, %v3008_v50 }
 0xdeb   :  { %v1888_v29 = vpop.f32.mrf.mxu1  ;;  %v2097_v41 = vadd.f32 %v2095_v6, %v2823_v0  ;;  %v2432_v6 = vld [vmem:[%s3181_s8] ss:$0 sm:$0xff]  ;;  %s2741_s8 = smov 8  }
 0xdec   :  { %v1892_v30 = vsel %vm149_vm2, %v1888_v29, -inf }
 0xded   :  { %1893 = vmax.xlane.f32.xlu0 %v1892_v30  ;;  %v2630_v31 = vpop.f32.mrf.mxu1 }
 0xe03   :  { %1903 = vrot.lane.b32.xlu0 %v2854_v9, %s2740_s22  ;;  %v2099_v9 = vsel %vm62_vm0, %v2097_v41, 0.0 }
 0xe76   :  { %v1894_v32 = vpop.xlane.xlu0 %1893 }
 0xe77   :  { %v1895_v27 = vsub.f32 %v1888_v29, %v1894_v32 }
 0xe79   :  { %v1896_v33 = vmul.f32 1.442695, %v1895_v27  ;;  %v2241_v27 = vld [vmem:[%s3180_s9 + $0x18] sm:$0xff] }
 0xe7a   :  { %v1904_v34 = vpop.permute.xlu0 %1903 }
 0xe7b   :  { %2716 = vpow2.f32 %v1896_v33  ;;  %2632 = vmatpush3.msra.mxu0 %v1904_v34  ;;  %v2240_v33 = vld [vmem:[%s3180_s9 + $0x10] sm:$0xff]  ;;  %v2239_v34 = vld [vmem:[%s3180_s9 + $0x8] sm:$0xff] }
 0xe7c   :  { %2641 = vmatprep.subr.mxu0 %v2147_v16 }
 0xe88   :  { %v2717_v37 = vpop.eup %2716 }
 0xe89   :  { %v1898_v40 = vsel %vm149_vm2, %v2717_v37, 0.0 }
 0xe8a   :  { %1899 = vadd.xlane.f32.xlu1 %v1898_v40 }
 0xe8e   :  { %2100 = vadd.xlane.f32.xlu1 %v2099_v9 }
 0xea8   :  { %v1809_v42 = vpop.f32.mrf.mxu0 }
 0xea9   :  { %v1813_v43 = vadd.f32 %v1809_v42, %v1572_v10 }
 0xeaa   :  { %v2625_v44 = vpop.f32.mrf.mxu0 }
 0xeab   :  { %v2435_v44 = vld [vmem:[%s3182_s10] ss:$0 sm:$0xff]  ;;  %s2743_s10 = smov 24  }
 0xf13   :  { %v1900_v45 = vpop.xlane.xlu1 %1899 }
 0xf14   :  { %2718 = vrcp.f32 %v1900_v45 }
 0xf17   :  { %v2101_v0 = vpop.xlane.xlu1 %2100 }
 0xf18   :  { %v2106_v50 = vmul.f32 0.03125, %v2101_v0 }
 0xf1a   :  { %v2108_v54 = vsub.f32 %v2097_v41, %v2106_v50 }
 0xf1c   :  { %v2110_v60 = vmul.f32 %v2108_v54, %v2108_v54 }
 0xf1e   :  { %v2112_v61 = vsel %vm62_vm0, %v2110_v60, 0.0 }
 0xf21   :  { %v2719_v46 = vpop.eup %2718 }
 0xf22   :  { %v3073_v47 = vmul.f32 %v2719_v46, %v2717_v37 }
 0xf24   :  { %2634 = vmatmul.mubr.msk.f32.vlgmr.msra.gmra.mxu0 %vm149_vm2, %v3073_v47 }
 0xf25   :  { %2642 = vmatpush3.msra.mxu0 %v2147_v16 }
 0xf26   :  { %2643 = vmatprep.subr.mxu0 %v2146_v17 }
 0xf27   :  { %2644 = vmatpush3.msra.mxu0 %v2146_v17  ;;  %v2439_v17 = vld [vmem:[%s3185_s12] ss:$0 sm:$0xff] }
 0xf28   :  { %2645 = vmatprep.subr.mxu0 %v2145_v18 }
 0xf29   :  { %2646 = vmatpush3.msra.mxu0 %v2145_v18 }
 0xf2a   :  { %2647 = vmatprep.subr.mxu0 %v2144_v19 }
 0xf2b   :  { %2648 = vmatpush3.msra.mxu0 %v2144_v19 }
 0xfe4   :  { %v1975_v48 = vpop.f32.mrf.mxu0 }
 0xfe5   :  { %2639 = vmatmul.mubr.msk.f32.vlgmr.msra.gmra.mxu1 %vm149_vm2, %v1975_v48 }
 0xfe6   :  { %v2635_v49 = vpop.f32.mrf.mxu0  ;;  %2653 = vmatpush3.msra.mxu1 %v2245_v20 }
 0xfe7   :  { %2654 = vmatprep.subr.mxu1 %v2244_v21 }
 0xfe8   :  { %2655 = vmatpush3.msra.mxu1 %v2244_v21 }
 0xfe9   :  { %2656 = vmatprep.subr.mxu1 %v2243_v22 }
 0xfea   :  { %2657 = vmatpush3.msra.mxu1 %v2243_v22 }
 0xfeb   :  { %2658 = vmatprep.subr.mxu1 %v2242_v23 }
 0xfec   :  { %2659 = vmatpush3.msra.mxu1 %v2242_v23 }
 0xfed   :  { %2660 = vmatprep.subr.mxu1 %v2241_v27 }
 0xfee   :  { %2661 = vmatpush3.msra.mxu1 %v2241_v27 }
 0xfef   :  { %2662 = vmatprep.subr.mxu1 %v2240_v33 }
 0xff0   :  { %2663 = vmatpush3.msra.mxu1 %v2240_v33 }
 0xff1   :  { %2664 = vmatprep.subr.mxu1 %v2239_v34 }
 0xff2   :  { %2665 = vmatpush3.msra.mxu1 %v2239_v34 }
0x10a5   :  { %v2048_v51 = vpop.f32.mrf.mxu1 }
0x10a6   :  { %v2052_v52 = vadd.f32 %v2048_v51, %v1813_v43 }
0x10a7   :  { %v2640_v53 = vpop.f32.mrf.mxu1 }
0x10a8   :  { %v2096_v55 = vadd.f32 %v2429_v36, %v2052_v52  ;;  %v2238_v36 = vld [vmem:[%s3180_s9] sm:$0xff] }
0x10a9   :  { %2666 = vmatprep.subr.mxu1 %v2238_v36 }
0x10aa   :  { %v2098_v57 = vadd.f32 %v2096_v55, %v2841_v5  ;;  %v2430_v5 = vld [vmem:[%s3177_s5] ss:$0 sm:$0xff]  ;;  %2667 = vmatpush3.msra.mxu1 %v2238_v36 }
0x10ac   :  { %v2102_v58 = vsel %vm62_vm0, %v2098_v57, 0.0 }
0x10ad   :  { %2103 = vadd.xlane.f32.xlu1 %v2102_v58 }
0x10b1   :  { %2113 = vadd.xlane.f32.xlu1 %v2112_v61 }
0x1136   :  { %v2104_v62 = vpop.xlane.xlu1 %2103 }
0x1137   :  { %v2107_v1 = vmul.f32 0.03125, %v2104_v62 }
0x1139   :  { %v2109_v2 = vsub.f32 %v2098_v57, %v2107_v1 }
0x113a   :  { %v2114_v39 = vpop.xlane.xlu1 %2113 }
0x113b   :  { %v2118_v4 = vmul.f32 0.03125, %v2114_v39  ;;  %v2111_v7 = vmul.f32 %v2109_v2, %v2109_v2 }
0x113d   :  { %v2120_v8 = vadd.f32 1e-05, %v2118_v4  ;;  %v2115_v10 = vsel %vm62_vm0, %v2111_v7, 0.0 }
0x113e   :  { %2116 = vadd.xlane.f32.xlu1 %v2115_v10 }
0x113f   :  { %2720 = vrsqrt.f32 %v2120_v8 }
0x114c   :  { %v2721_v12 = vpop.eup %2720 }
0x114d   :  { %v2124_v13 = vmul.f32 %v2721_v12, %v2108_v54 }
0x114f   :  { %v2133_v15 = vmul.f32 %v2430_v5, %v2124_v13 }
0x1151   :  { %v3088_v3 = vadd.f32 %v2431_v14, %v2133_v15 }
0x1153   :  { %2649 = vmatprep.mubr.msk.f32.mxu0 %vm62_vm0, %v3088_v3 }
0x11c7   :  { %v2117_v11 = vpop.xlane.xlu1 %2116 }
0x11c8   :  { %v2119_v26 = vmul.f32 0.03125, %v2117_v11 }
0x11ca   :  { %v2121_v28 = vadd.f32 1e-05, %v2119_v26 }
0x11cc   :  { %2722 = vrsqrt.f32 %v2121_v28 }
0x11d9   :  { %v2723_v29 = vpop.eup %2722 }
0x11da   :  { %v2125_v30 = vmul.f32 %v2723_v29, %v2109_v2 }
0x11dc   :  { %v2134_v31 = vmul.f32 %v2430_v5, %v2125_v30 }
0x11de   :  { %v2143_v32 = vadd.f32 %v2431_v14, %v2134_v31 }
0x11e0   :  { %2650 = vmatmul.mubr.msk.f32.vlgmr.msra.gmra.mxu0 %vm62_vm0, %v2143_v32 }
0x12a0   :  { %v2651_v37 = vpop.f32.mrf.mxu0 }
0x12a1   :  { %v2233_v40 = vadd.f32 %v2651_v37, %v2432_v6 }
0x12a2   :  { %v2227_v41 = vpop.f32.mrf.mxu0 }
0x12a3   :  { %v2228_v9 = vadd.f32 %v2432_v6, %v2227_v41  ;;  %v2237_v43 = vmax.f32 %v2233_v40, 0.0 }
0x12a5   :  { %v2236_v42 = vmax.f32 %v2228_v9, 0.0 }
0x12a7   :  { %2668 = vmatprep.mubr.msk.f32.mxu1 %vm2086_vm3, %v2236_v42 }
0x12a8   :  { %2669 = vmatmul.mubr.msk.f32.vlgmr.msra.gmra.mxu1 %vm2086_vm3, %v2237_v43 }
0x1368   :  { %v2670_v45 = vpop.f32.mrf.mxu1 }
0x1369   :  { %v2331_v46 = vadd.f32 %v2670_v45, %v2435_v44 }
0x136a   :  { %v2325_v48 = vpop.f32.mrf.mxu1 }
0x136b   :  { %v2326_v49 = vadd.f32 %v2435_v44, %v2325_v48  ;;  %v2335_v0 = vadd.f32 %v2331_v46, %v2143_v32 }
0x136d   :  { %v2339_v50 = vsel %vm62_vm0, %v2335_v0, 0.0  ;;  %v2334_v51 = vadd.f32 %v2326_v49, %v3088_v3  ;;  %v2438_v3 = vld [vmem:[%s3184_s11] ss:$0 sm:$0xff] }
0x136e   :  { %2340 = vadd.xlane.f32.xlu1 %v2339_v50 }
0x136f   :  { %v2336_v52 = vsel %vm62_vm0, %v2334_v51, 0.0 }
0x1370   :  { %2337 = vadd.xlane.f32.xlu0 %v2336_v52 }
0x137f   :  { %2053 = vrot.lane.b32.xlu1 %v2894_v38, %s2741_s8 }
0x1383   :  { %2056 = vrot.lane.b32.xlu1 %v2935_v63, %s2742_s6 }
0x1386   :  { %2059 = vrot.lane.b32.xlu0 %v2967_v25, %s2743_s10 }
0x1387   :  { %2062 = vrot.lane.b32.xlu1 %v3011_v56, %s2744_s16 }
0x13f7   :  { %v2341_v53 = vpop.xlane.xlu1 %2340 }
0x13f8   :  { %v2343_v54 = vmul.f32 0.03125, %v2341_v53 }
0x13f9   :  { %v2338_v38 = vpop.xlane.xlu0 %2337 }
0x13fa   :  { %v2345_v55 = vsub.f32 %v2335_v0, %v2343_v54  ;;  %v2342_v63 = vmul.f32 0.03125, %v2338_v38 }
0x13fb   :  { %v2054_v61 = vpop.permute.xlu1 %2053 }
0x13fc   :  { %v2347_v57 = vmul.f32 %v2345_v55, %v2345_v55  ;;  %v2344_v25 = vsub.f32 %v2334_v51, %v2342_v63 }
0x13fd   :  { %v2060_v7 = vpop.permute.xlu0 %2059 }
0x13fe   :  { %v2351_v58 = vsel %vm62_vm0, %v2347_v57, 0.0  ;;  %v2346_v56 = vmul.f32 %v2344_v25, %v2344_v25 }
0x13ff   :  { %2352 = vadd.xlane.f32.xlu1 %v2351_v58  ;;  %v2057_v62 = vpop.permute.xlu1 %2056 }
0x1400   :  { %v2348_v60 = vsel %vm62_vm0, %v2346_v56, 0.0 }
0x1403   :  { %v2063_v1 = vpop.permute.xlu1 %2062 }
0x1410   :  { %2065 = vrot.lane.b32.xlu1 %v3017_v59, %s2740_s22 }
0x1414   :  { %2068 = vrot.lane.b32.xlu1 %v3048_v24, %s2737_s17  ;;  %v2074_v24 = vsel %vm149_vm2, %v2888_v35, %v2054_v61 }
0x1418   :  { %2071 = vrot.lane.b32.xlu1 %v3073_v47, %s2736_s28  ;;  %v2076_v47 = vsel %vm2075_vm4, %v2074_v24, %v2057_v62 }
0x1419   :  { %v2078_v10 = vsel %vm2077_vm5, %v2076_v47, %v2060_v7 }
0x141a   :  { %v2079_v12 = vsel %vm62_vm0, %v2078_v10, %v2063_v1 }
0x143c   :  { %2349 = vadd.xlane.f32.xlu1 %v2348_v60 }
0x1488   :  { %v2353_v2 = vpop.xlane.xlu1 %2352 }
0x1489   :  { %v2355_v39 = vmul.f32 0.03125, %v2353_v2 }
0x148b   :  { %v2357_v59 = vadd.f32 1e-05, %v2355_v39 }
0x148c   :  { %v2066_v4 = vpop.permute.xlu1 %2065 }
0x148d   :  { %2724 = vrsqrt.f32 %v2357_v59  ;;  %v2081_v5 = vsel %vm2080_vm6, %v2079_v12, %v2066_v4 }
0x1490   :  { %v2069_v8 = vpop.permute.xlu1 %2068 }
0x1491   :  { %v2083_v13 = vsel %vm2082_vm7, %v2081_v5, %v2069_v8 }
0x1494   :  { %v2072_v14 = vpop.permute.xlu1 %2071 }
0x1495   :  { %v2085_v15 = vsel %vm2084_vm8, %v2083_v13, %v2072_v14 }
0x1496   :  { %2087 = vst.msk [vmem:[%s3183_s14] sm:$0xff] %vm2086_vm3, %v2085_v15 }
0x149a   :  { %v2725_v35 = vpop.eup %2724 }
0x149b   :  { %v2361_v16 = vmul.f32 %v2725_v35, %v2345_v55 }
0x149d   :  { %v2370_v18 = vmul.f32 %v2438_v3, %v2361_v16 }
0x149f   :  { %v2379_v19 = vadd.f32 %v2439_v17, %v2370_v18 }
0x14a1   :  { %2381 = vrot.lane.b32.xlu1 %v2379_v19, %s2744_s16 }
0x14c5   :  { %v2350_v20 = vpop.xlane.xlu1 %2349 }
0x14c6   :  { %v2354_v21 = vmul.f32 0.03125, %v2350_v20 }
0x14c8   :  { %v2356_v22 = vadd.f32 1e-05, %v2354_v21 }
0x14ca   :  { %2726 = vrsqrt.f32 %v2356_v22 }
0x14d7   :  { %v2727_v23 = vpop.eup %2726 }
0x14d8   :  { %v2360_v11 = vmul.f32 %v2727_v23, %v2344_v25 }
0x14da   :  { %v2369_v26 = vmul.f32 %v2438_v3, %v2360_v11 }
0x14dc   :  { %v2378_v28 = vadd.f32 %v2439_v17, %v2369_v26 }
0x1513   :  { %v2382_v29 = vpop.permute.xlu1 %2381 }
0x1514   :  { %v2384_v30 = vsel %vm62_vm0, %v2378_v28, %v2382_v29 }
0x1515   :  { %2385 = vst.msk [vmem:[%s3186_s13] sm:$0xff] %vm2086_vm3, %v2384_v30 }

</bundles_post_ra>
